<compile_context>
chip_gen: v5e
topology: v5e:2x2
jax: 0.10.0
libtpu: 0.0.40
codegen_flags: <defaults>
</compile_context>

<pallas_src>
import math
import jax
import jax.numpy as jnp
from jax import lax
from jax.experimental import pallas as pl
from jax.experimental.pallas import tpu as pltpu


def _round_up(x, m):
    return ((x + m - 1) // m) * m


def _gru_chunk_kernel(xproj_ref, wh_ref, bhn_ref, out_ref, h_ref):
    """One (batch-block, time-chunk) grid step of the GRU recurrence.

    xproj_ref: (TT, BB, 3Hp)  precomputed x@W_i + (b_ir+b_hr | b_iz+b_hz | b_in)
    wh_ref:    (Hp, 3Hp)      packed recurrent weights [W_hr | W_hz | W_hn]
    bhn_ref:   (1, Hp)        recurrent n-gate bias (must stay inside r*(...))
    out_ref:   (TT, BB, Hp)   time-major hidden-state chunk (f32)
    h_ref:     (BB, Hp) f32   VMEM scratch carrying h across time chunks
    """
    TT, BB, G = xproj_ref.shape
    Hp = G // 3

    # New batch block -> reset the carried hidden state.
    @pl.when(pl.program_id(1) == 0)
    def _():
        h_ref[...] = jnp.zeros_like(h_ref)

    # Hoist the (1,Hp)->(BB,Hp) broadcast out of the time loop (JAX does not CSE it).
    bhn = jnp.broadcast_to(bhn_ref[...].astype(jnp.float32), (BB, Hp))
    w_dtype = wh_ref.dtype

    h = h_ref[...]
    # Static unroll over the (small) time chunk: lets the scheduler overlap the next
    # step's xproj loads and out stores with this step's MXU drain / EUP work.
    for tt in range(TT):
        # Single fused recurrent matmul; wh_ref is used in place (no hoisted vreg
        # copy) so the RHS can stay resident across the unrolled steps.
        hg = jnp.dot(h.astype(w_dtype), wh_ref[...],
                     preferred_element_type=jnp.float32)            # (BB, 3Hp) f32
        # Per-gate slices loaded/upcast right before use -> lower vreg pressure.
        r = jax.nn.sigmoid(xproj_ref[tt, :, :Hp].astype(jnp.float32)
                           + hg[:, :Hp])
        z = jax.nn.sigmoid(xproj_ref[tt, :, Hp:2 * Hp].astype(jnp.float32)
                           + hg[:, Hp:2 * Hp])
        n = jnp.tanh(xproj_ref[tt, :, 2 * Hp:].astype(jnp.float32)
                     + r * (hg[:, 2 * Hp:] + bhn))
        h = (1.0 - z) * n + z * h
        out_ref[tt] = h.astype(out_ref.dtype)                       # lane-dense store

    h_ref[...] = h                                                  # carry to next chunk


def rnn_encoder_forward(input_seq, params, use_bf16=None, time_chunk=8):
    """Pallas GRU encoder forward.

    input_seq: (B, T) or (B, T, F) float32
    params: per-gate weights (F,H)/(H,H) and (1,H) biases (pre-transposed).
    Returns (gru_out (B, T, H), hidden (B, H)).
    """
    if use_bf16 is None:
        # bf16 x bf16 -> f32 dots are MXU-native on TPU but not supported by the
        # CPU dot thunk used in interpret-mode runs; pick per backend.
        use_bf16 = jax.default_backend() == "tpu"

    if input_seq.ndim < 3:
        input_seq = input_seq[..., None]   # mirrors input_seq.unsqueeze_(2)

    B, T, F = input_seq.shape
    H = params["w_hr"].shape[0]

    # Lane/sublane-dense padded sizes.
    Hp = _round_up(H, 128)
    G = 3 * Hp

    # Relaxed batch padding: round B to a sublane multiple, split into <=128-row
    # blocks, pad only to BB*nb (not to a multiple of 128).
    Bp8 = _round_up(B, 8)
    if Bp8 <= 128:
        nb, BB = 1, Bp8
    else:
        nb = -(-Bp8 // 128)                       # number of batch blocks
        BB = _round_up(-(-Bp8 // nb), 8)          # rows per block (sublane multiple)
    Bp = BB * nb

    # Time chunking: bounded VMEM per block, pipelined chunk prefetch.
    TT = max(1, min(time_chunk, T))
    Tp = _round_up(T, TT)
    nt = Tp // TT

    w_dtype = jnp.bfloat16 if use_bf16 else jnp.float32

    def pad_cols(w):
        return jnp.pad(w, ((0, 0), (0, Hp - w.shape[1])))

    def pad_rows_cols(w):
        return jnp.pad(w, ((0, Hp - w.shape[0]), (0, Hp - w.shape[1])))

    # Pack + pad weights (per-gate zero padding keeps padded hidden columns at 0).
    wi = jnp.concatenate([pad_cols(params["w_ir"]),
                          pad_cols(params["w_iz"]),
                          pad_cols(params["w_in"])], axis=1)          # (F, 3Hp)
    wh = jnp.concatenate([pad_rows_cols(params["w_hr"]),
                          pad_rows_cols(params["w_hz"]),
                          pad_rows_cols(params["w_hn"])], axis=1)     # (Hp, 3Hp)
    # Pre-combined biases: b_r = b_ir+b_hr, b_z = b_iz+b_hz, b_in alone; b_hn stays
    # separate because it sits inside r * (h W_hn + b_hn).
    b_packed = jnp.concatenate([pad_cols(params["b_ir"] + params["b_hr"]),
                                pad_cols(params["b_iz"] + params["b_hz"]),
                                pad_cols(params["b_in"])], axis=1)    # (1, 3Hp)
    b_hn = pad_cols(params["b_hn"]).astype(jnp.float32)               # (1, Hp)

    # Hoisted input projection: one GEMM, output already time-major (T, Bp, 3Hp).
    x_pad = jnp.pad(input_seq.astype(jnp.float32), ((0, Bp - B), (0, 0), (0, 0)))
    xproj = jnp.einsum("btf,fg->tbg",
                       x_pad.astype(w_dtype), wi.astype(w_dtype),
                       preferred_element_type=jnp.float32) + b_packed
    xproj = xproj.astype(w_dtype)
    if Tp > T:
        # Zero xproj for padded timesteps: they only update h AFTER the last valid
        # step, so all returned outputs (and hidden == out[:, T-1]) are unaffected.
        xproj = jnp.pad(xproj, ((0, Tp - T), (0, 0), (0, 0)))
    wh = wh.astype(w_dtype)

    out_tm = pl.pallas_call(
        _gru_chunk_kernel,
        out_shape=jax.ShapeDtypeStruct((Tp, Bp, Hp), jnp.float32),
        grid_spec=pltpu.PrefetchScalarGridSpec(
            num_scalar_prefetch=0,
            grid=(nb, nt),                        # (batch blocks, time chunks)
            in_specs=[pl.BlockSpec((TT, BB, G), lambda b, t: (t, b, 0)),
                      pl.BlockSpec((Hp, G), lambda b, t: (0, 0)),
                      pl.BlockSpec((1, Hp), lambda b, t: (0, 0))],
            out_specs=pl.BlockSpec((TT, BB, Hp), lambda b, t: (t, b, 0)),
            scratch_shapes=[pltpu.VMEM((BB, Hp), jnp.float32)],       # carried h
        ),
        compiler_params=pltpu.CompilerParams(
            dimension_semantics=("parallel", "arbitrary"),   # batch blocks || ; time serial
            vmem_limit_bytes=48 * 1024 * 1024),
    )(xproj, wh, b_hn)

    # Slice padding off (tiny), then transpose to batch-first.
    gru_out = jnp.transpose(out_tm[:T, :B, :H], (1, 0, 2))            # (B, T, H)
    hidden = gru_out[:, -1, :]                                        # == h_T exactly
    return gru_out, hidden


def init_gru_params(key, input_feature_len, hidden_size):
    """Deterministic init matching nn.GRU shapes: U(-1/sqrt(H), 1/sqrt(H)).

    Stored pre-transposed: W_i* -> (F, H), W_h* -> (H, H), biases -> (1, H).
    """
    k = 1.0 / math.sqrt(hidden_size)
    names = ["w_ir", "w_iz", "w_in", "w_hr", "w_hz", "w_hn",
             "b_ir", "b_iz", "b_in", "b_hr", "b_hz", "b_hn"]
    keys = jax.random.split(key, len(names))
    shapes = {
        "w_ir": (input_feature_len, hidden_size),
        "w_iz": (input_feature_len, hidden_size),
        "w_in": (input_feature_len, hidden_size),
        "w_hr": (hidden_size, hidden_size),
        "w_hz": (hidden_size, hidden_size),
        "w_hn": (hidden_size, hidden_size),
        "b_ir": (1, hidden_size),
        "b_iz": (1, hidden_size),
        "b_in": (1, hidden_size),
        "b_hr": (1, hidden_size),
        "b_hz": (1, hidden_size),
        "b_hn": (1, hidden_size),
    }
    return {n: jax.random.uniform(kk, shapes[n], jnp.float32, minval=-k, maxval=k)
            for n, kk in zip(names, keys)}


def gru_reference(input_seq, params, use_bf16=None):
    """Pure-JAX reference (lax.scan) mirroring the kernel's precision choices."""
    if use_bf16 is None:
        use_bf16 = jax.default_backend() == "tpu"
    if input_seq.ndim < 3:
        input_seq = input_seq[..., None]
    B, T, F = input_seq.shape
    H = params["w_hr"].shape[0]
    w_dtype = jnp.bfloat16 if use_bf16 else jnp.float32

    wi = jnp.concatenate([params["w_ir"], params["w_iz"], params["w_in"]],
                         axis=1).astype(w_dtype)
    wh = jnp.concatenate([params["w_hr"], params["w_hz"], params["w_hn"]],
                         axis=1).astype(w_dtype)
    b = jnp.concatenate([params["b_ir"] + params["b_hr"],
                         params["b_iz"] + params["b_hz"],
                         params["b_in"]], axis=1)
    b_hn = params["b_hn"]

    x_tm = jnp.transpose(input_seq.astype(jnp.float32), (1, 0, 2))
    xproj = (jnp.einsum("tbf,fg->tbg", x_tm.astype(w_dtype), wi,
                        preferred_element_type=jnp.float32) + b).astype(w_dtype)

    def step(h, xp):
        xp = xp.astype(jnp.float32)
        hg = jnp.dot(h.astype(w_dtype), wh, preferred_element_type=jnp.float32)
        r = jax.nn.sigmoid(xp[:, :H] + hg[:, :H])
        z = jax.nn.sigmoid(xp[:, H:2 * H] + hg[:, H:2 * H])
        n = jnp.tanh(xp[:, 2 * H:] + r * (hg[:, 2 * H:] + b_hn))
        h_new = (1.0 - z) * n + z * h
        return h_new, h_new

    h0 = jnp.zeros((B, H), jnp.float32)
    h_last, ys = lax.scan(step, h0, xproj)
    return jnp.transpose(ys, (1, 0, 2)), h_last


def gru_reference_f32(input_seq, params):
    """Full-f32 reference of the original per-gate GRU math (module semantics)."""
    if input_seq.ndim < 3:
        input_seq = input_seq[..., None]
    B = input_seq.shape[0]
    H = params["w_hr"].shape[0]
    x_tm = jnp.transpose(input_seq.astype(jnp.float32), (1, 0, 2))

    def step(h, xt):
        r = jax.nn.sigmoid(xt @ params["w_ir"] + params["b_ir"]
                           + h @ params["w_hr"] + params["b_hr"])
        z = jax.nn.sigmoid(xt @ params["w_iz"] + params["b_iz"]
                           + h @ params["w_hz"] + params["b_hz"])
        n = jnp.tanh(xt @ params["w_in"] + params["b_in"]
                     + r * (h @ params["w_hn"] + params["b_hn"]))
        h_new = (1.0 - z) * n + z * h
        return h_new, h_new

    h0 = jnp.zeros((B, H), jnp.float32)
    h_last, ys = lax.scan(step, h0, x_tm)
    return jnp.transpose(ys, (1, 0, 2)), h_last


if __name__ == "__main__":
    # Small shapes consistent with the module's forward.
    B, T, F, H = 2, 8, 4, 32

    key = jax.random.PRNGKey(0)
    k_x, k_p = jax.random.split(key)
    input_seq = jax.random.normal(k_x, (B, T, F), jnp.float32)
    params = init_gru_params(k_p, input_feature_len=F, hidden_size=H)

    gru_out, hidden = rnn_encoder_forward(input_seq, params)
    gru_out = jax.block_until_ready(gru_out)
    hidden = jax.block_until_ready(hidden)

    assert gru_out.shape == (B, T, H)
    assert hidden.shape == (B, H)

    # Check against a reference that mirrors the kernel's precision choices
    # (bf16 weights + f32 accum on TPU; plain f32 elsewhere) -> tight tolerance.
    ref_out, ref_hidden = gru_reference(input_seq, params)
    assert jnp.allclose(gru_out, ref_out, atol=5e-3, rtol=5e-3)
    assert jnp.allclose(hidden, ref_hidden, atol=5e-3, rtol=5e-3)

    # Loose check against full-f32 module semantics (weight quantization only).
    f32_out, f32_hidden = gru_reference_f32(input_seq, params)
    assert jnp.allclose(gru_out, f32_out, atol=5e-2, rtol=5e-2)
    assert jnp.allclose(hidden, f32_hidden, atol=5e-2, rtol=5e-2)

    print("KERNEL_OK")
</pallas_src>

<mosaic_0001>
module attributes {stable_mosaic.version = 11 : i64} {
  func.func @_gru_chunk_kernel(%arg0: i32, %arg1: i32, %arg2: memref<8x8x384xf32, #tpu.memory_space<vmem>>, %arg3: memref<128x384xf32, #tpu.memory_space<vmem>>, %arg4: memref<1x128xf32, #tpu.memory_space<vmem>>, %arg5: memref<8x8x128xf32, #tpu.memory_space<vmem>>, %arg6: memref<8x128xf32, #tpu.memory_space<vmem>>) attributes {dimension_semantics = [#tpu.dimension_semantics<parallel>, #tpu.dimension_semantics<arbitrary>], iteration_bounds = array<i64: 1, 1>, scalar_prefetch = 0 : i64, scratch_operands = 1 : i64, tpu.core_type = #tpu.core_type<tc>, window_params = [{transform_indices = @transform_0, window_bounds = array<i64: 8, 8, 384>}, {pipeline_mode = #tpu.pipeline_mode<synchronous>, transform_indices = @transform_1, window_bounds = array<i64: 128, 384>}, {pipeline_mode = #tpu.pipeline_mode<synchronous>, transform_indices = @transform_2, window_bounds = array<i64: 1, 128>}, {transform_indices = @transform_3, window_bounds = array<i64: 8, 8, 128>}]} {
    %c0_i32 = arith.constant 0 : i32
    %0 = arith.cmpi eq, %arg1, %c0_i32 : i32
    %1 = arith.extui %0 : i1 to i32
    %c0_i32_0 = arith.constant 0 : i32
    %2 = arith.cmpi ne, %1, %c0_i32_0 : i32
    scf.if %2 {
      %cst_140 = arith.constant 0.000000e+00 : f32
      %288 = vector.broadcast %cst_140 : f32 to vector<8x128xf32>
      %c0_141 = arith.constant 0 : index
      %c0_142 = arith.constant 0 : index
      %289 = vector.load %arg6[%c0_141, %c0_142] : memref<8x128xf32, #tpu.memory_space<vmem>>, vector<8x128xf32>
      tpu.vector_store %arg6[%c0_141, %c0_142], %288 {strides = array<i32>} : memref<8x128xf32, #tpu.memory_space<vmem>>, vector<8x128xf32>,
    } else {
    }
    %c0 = arith.constant 0 : index
    %c0_1 = arith.constant 0 : index
    %3 = vector.load %arg4[%c0, %c0_1] : memref<1x128xf32, #tpu.memory_space<vmem>>, vector<1x128xf32>
    %4 = vector.shape_cast %3 : vector<1x128xf32> to vector<1x128xf32>
    %5 = vector.broadcast %4 : vector<1x128xf32> to vector<8x128xf32>
    %c0_2 = arith.constant 0 : index
    %c0_3 = arith.constant 0 : index
    %6 = vector.load %arg6[%c0_2, %c0_3] : memref<8x128xf32, #tpu.memory_space<vmem>>, vector<8x128xf32>
    %c0_4 = arith.constant 0 : index
    %c0_5 = arith.constant 0 : index
    %7 = vector.load %arg3[%c0_4, %c0_5] : memref<128x384xf32, #tpu.memory_space<vmem>>, vector<128x384xf32>
    %cst = arith.constant dense<0.000000e+00> : vector<8x384xf32>
    %8 = tpu.matmul %6, %7, %cst {dimension_numbers = #tpu.dot_dimension_numbers<[1], [0], [0], [1], [0, 0, 1, 1], [], []>} : vector<8x128xf32>, vector<128x384xf32>, vector<8x384xf32> -> vector<8x384xf32>
    %c0_6 = arith.constant 0 : index
    %c0_7 = arith.constant 0 : index
    %c0_8 = arith.constant 0 : index
    %9 = vector.load %arg2[%c0_6, %c0_7, %c0_8] : memref<8x8x384xf32, #tpu.memory_space<vmem>>, vector<1x8x128xf32>
    %10 = vector.shape_cast %9 : vector<1x8x128xf32> to vector<8x128xf32>
    %11 = vector.extract_strided_slice %8 {offsets = [0, 0], sizes = [8, 128], strides = [1, 1]} : vector<8x384xf32> to vector<8x128xf32>
    %12 = arith.addf %10, %11 : vector<8x128xf32>
    %13 = arith.negf %12 : vector<8x128xf32>
    %14 = math.exp %13 : vector<8x128xf32>
    %cst_9 = arith.constant 1.000000e+00 : f32
    %15 = vector.broadcast %cst_9 : f32 to vector<8x128xf32>
    %16 = arith.addf %15, %14 : vector<8x128xf32>
    %17 = arith.divf %15, %16 : vector<8x128xf32>
    %c0_10 = arith.constant 0 : index
    %c0_11 = arith.constant 0 : index
    %c128 = arith.constant 128 : index
    %18 = vector.load %arg2[%c0_10, %c0_11, %c128] : memref<8x8x384xf32, #tpu.memory_space<vmem>>, vector<1x8x128xf32>
    %19 = vector.shape_cast %18 : vector<1x8x128xf32> to vector<8x128xf32>
    %20 = vector.extract_strided_slice %8 {offsets = [0, 128], sizes = [8, 128], strides = [1, 1]} : vector<8x384xf32> to vector<8x128xf32>
    %21 = arith.addf %19, %20 : vector<8x128xf32>
    %22 = arith.negf %21 : vector<8x128xf32>
    %23 = math.exp %22 : vector<8x128xf32>
    %cst_12 = arith.constant 1.000000e+00 : f32
    %24 = vector.broadcast %cst_12 : f32 to vector<8x128xf32>
    %25 = arith.addf %24, %23 : vector<8x128xf32>
    %26 = arith.divf %24, %25 : vector<8x128xf32>
    %c0_13 = arith.constant 0 : index
    %c0_14 = arith.constant 0 : index
    %c256 = arith.constant 256 : index
    %27 = vector.load %arg2[%c0_13, %c0_14, %c256] : memref<8x8x384xf32, #tpu.memory_space<vmem>>, vector<1x8x128xf32>
    %28 = vector.shape_cast %27 : vector<1x8x128xf32> to vector<8x128xf32>
    %29 = vector.extract_strided_slice %8 {offsets = [0, 256], sizes = [8, 128], strides = [1, 1]} : vector<8x384xf32> to vector<8x128xf32>
    %30 = arith.addf %29, %5 : vector<8x128xf32>
    %31 = arith.mulf %17, %30 : vector<8x128xf32>
    %32 = arith.addf %28, %31 : vector<8x128xf32>
    %33 = math.tanh %32 : vector<8x128xf32>
    %cst_15 = arith.constant 1.000000e+00 : f32
    %34 = vector.broadcast %cst_15 : f32 to vector<8x128xf32>
    %35 = arith.subf %34, %26 : vector<8x128xf32>
    %36 = arith.mulf %35, %33 : vector<8x128xf32>
    %37 = arith.mulf %26, %6 : vector<8x128xf32>
    %38 = arith.addf %36, %37 : vector<8x128xf32>
    %c0_16 = arith.constant 0 : index
    %c0_17 = arith.constant 0 : index
    %c0_18 = arith.constant 0 : index
    %39 = vector.load %arg5[%c0_16, %c0_17, %c0_18] : memref<8x8x128xf32, #tpu.memory_space<vmem>>, vector<1x8x128xf32>
    %40 = vector.shape_cast %39 : vector<1x8x128xf32> to vector<8x128xf32>
    %41 = vector.shape_cast %38 : vector<8x128xf32> to vector<1x8x128xf32>
    tpu.vector_store %arg5[%c0_16, %c0_17, %c0_18], %41 {strides = array<i32>} : memref<8x8x128xf32, #tpu.memory_space<vmem>>, vector<1x8x128xf32>,
    %c0_19 = arith.constant 0 : index
    %c0_20 = arith.constant 0 : index
    %42 = vector.load %arg3[%c0_19, %c0_20] : memref<128x384xf32, #tpu.memory_space<vmem>>, vector<128x384xf32>
    %cst_21 = arith.constant dense<0.000000e+00> : vector<8x384xf32>
    %43 = tpu.matmul %38, %42, %cst_21 {dimension_numbers = #tpu.dot_dimension_numbers<[1], [0], [0], [1], [0, 0, 1, 1], [], []>} : vector<8x128xf32>, vector<128x384xf32>, vector<8x384xf32> -> vector<8x384xf32>
    %c1 = arith.constant 1 : index
    %c0_22 = arith.constant 0 : index
    %c0_23 = arith.constant 0 : index
    %44 = vector.load %arg2[%c1, %c0_22, %c0_23] : memref<8x8x384xf32, #tpu.memory_space<vmem>>, vector<1x8x128xf32>
    %45 = vector.shape_cast %44 : vector<1x8x128xf32> to vector<8x128xf32>
    %46 = vector.extract_strided_slice %43 {offsets = [0, 0], sizes = [8, 128], strides = [1, 1]} : vector<8x384xf32> to vector<8x128xf32>
    %47 = arith.addf %45, %46 : vector<8x128xf32>
    %48 = arith.negf %47 : vector<8x128xf32>
    %49 = math.exp %48 : vector<8x128xf32>
    %cst_24 = arith.constant 1.000000e+00 : f32
    %50 = vector.broadcast %cst_24 : f32 to vector<8x128xf32>
    %51 = arith.addf %50, %49 : vector<8x128xf32>
    %52 = arith.divf %50, %51 : vector<8x128xf32>
    %c1_25 = arith.constant 1 : index
    %c0_26 = arith.constant 0 : index
    %c128_27 = arith.constant 128 : index
    %53 = vector.load %arg2[%c1_25, %c0_26, %c128_27] : memref<8x8x384xf32, #tpu.memory_space<vmem>>, vector<1x8x128xf32>
    %54 = vector.shape_cast %53 : vector<1x8x128xf32> to vector<8x128xf32>
    %55 = vector.extract_strided_slice %43 {offsets = [0, 128], sizes = [8, 128], strides = [1, 1]} : vector<8x384xf32> to vector<8x128xf32>
    %56 = arith.addf %54, %55 : vector<8x128xf32>
    %57 = arith.negf %56 : vector<8x128xf32>
    %58 = math.exp %57 : vector<8x128xf32>
    %cst_28 = arith.constant 1.000000e+00 : f32
    %59 = vector.broadcast %cst_28 : f32 to vector<8x128xf32>
    %60 = arith.addf %59, %58 : vector<8x128xf32>
    %61 = arith.divf %59, %60 : vector<8x128xf32>
    %c1_29 = arith.constant 1 : index
    %c0_30 = arith.constant 0 : index
    %c256_31 = arith.constant 256 : index
    %62 = vector.load %arg2[%c1_29, %c0_30, %c256_31] : memref<8x8x384xf32, #tpu.memory_space<vmem>>, vector<1x8x128xf32>
    %63 = vector.shape_cast %62 : vector<1x8x128xf32> to vector<8x128xf32>
    %64 = vector.extract_strided_slice %43 {offsets = [0, 256], sizes = [8, 128], strides = [1, 1]} : vector<8x384xf32> to vector<8x128xf32>
    %65 = arith.addf %64, %5 : vector<8x128xf32>
    %66 = arith.mulf %52, %65 : vector<8x128xf32>
    %67 = arith.addf %63, %66 : vector<8x128xf32>
    %68 = math.tanh %67 : vector<8x128xf32>
    %cst_32 = arith.constant 1.000000e+00 : f32
    %69 = vector.broadcast %cst_32 : f32 to vector<8x128xf32>
    %70 = arith.subf %69, %61 : vector<8x128xf32>
    %71 = arith.mulf %70, %68 : vector<8x128xf32>
    %72 = arith.mulf %61, %38 : vector<8x128xf32>
    %73 = arith.addf %71, %72 : vector<8x128xf32>
    %c1_33 = arith.constant 1 : index
    %c0_34 = arith.constant 0 : index
    %c0_35 = arith.constant 0 : index
    %74 = vector.load %arg5[%c1_33, %c0_34, %c0_35] : memref<8x8x128xf32, #tpu.memory_space<vmem>>, vector<1x8x128xf32>
    %75 = vector.shape_cast %74 : vector<1x8x128xf32> to vector<8x128xf32>
    %76 = vector.shape_cast %73 : vector<8x128xf32> to vector<1x8x128xf32>
    tpu.vector_store %arg5[%c1_33, %c0_34, %c0_35], %76 {strides = array<i32>} : memref<8x8x128xf32, #tpu.memory_space<vmem>>, vector<1x8x128xf32>,
    %c0_36 = arith.constant 0 : index
    %c0_37 = arith.constant 0 : index
    %77 = vector.load %arg3[%c0_36, %c0_37] : memref<128x384xf32, #tpu.memory_space<vmem>>, vector<128x384xf32>
    %cst_38 = arith.constant dense<0.000000e+00> : vector<8x384xf32>
    %78 = tpu.matmul %73, %77, %cst_38 {dimension_numbers = #tpu.dot_dimension_numbers<[1], [0], [0], [1], [0, 0, 1, 1], [], []>} : vector<8x128xf32>, vector<128x384xf32>, vector<8x384xf32> -> vector<8x384xf32>
    %c2 = arith.constant 2 : index
    %c0_39 = arith.constant 0 : index
    %c0_40 = arith.constant 0 : index
    %79 = vector.load %arg2[%c2, %c0_39, %c0_40] : memref<8x8x384xf32, #tpu.memory_space<vmem>>, vector<1x8x128xf32>
    %80 = vector.shape_cast %79 : vector<1x8x128xf32> to vector<8x128xf32>
    %81 = vector.extract_strided_slice %78 {offsets = [0, 0], sizes = [8, 128], strides = [1, 1]} : vector<8x384xf32> to vector<8x128xf32>
    %82 = arith.addf %80, %81 : vector<8x128xf32>
    %83 = arith.negf %82 : vector<8x128xf32>
    %84 = math.exp %83 : vector<8x128xf32>
    %cst_41 = arith.constant 1.000000e+00 : f32
    %85 = vector.broadcast %cst_41 : f32 to vector<8x128xf32>
    %86 = arith.addf %85, %84 : vector<8x128xf32>
    %87 = arith.divf %85, %86 : vector<8x128xf32>
    %c2_42 = arith.constant 2 : index
    %c0_43 = arith.constant 0 : index
    %c128_44 = arith.constant 128 : index
    %88 = vector.load %arg2[%c2_42, %c0_43, %c128_44] : memref<8x8x384xf32, #tpu.memory_space<vmem>>, vector<1x8x128xf32>
    %89 = vector.shape_cast %88 : vector<1x8x128xf32> to vector<8x128xf32>
    %90 = vector.extract_strided_slice %78 {offsets = [0, 128], sizes = [8, 128], strides = [1, 1]} : vector<8x384xf32> to vector<8x128xf32>
    %91 = arith.addf %89, %90 : vector<8x128xf32>
    %92 = arith.negf %91 : vector<8x128xf32>
    %93 = math.exp %92 : vector<8x128xf32>
    %cst_45 = arith.constant 1.000000e+00 : f32
    %94 = vector.broadcast %cst_45 : f32 to vector<8x128xf32>
    %95 = arith.addf %94, %93 : vector<8x128xf32>
    %96 = arith.divf %94, %95 : vector<8x128xf32>
    %c2_46 = arith.constant 2 : index
    %c0_47 = arith.constant 0 : index
    %c256_48 = arith.constant 256 : index
    %97 = vector.load %arg2[%c2_46, %c0_47, %c256_48] : memref<8x8x384xf32, #tpu.memory_space<vmem>>, vector<1x8x128xf32>
    %98 = vector.shape_cast %97 : vector<1x8x128xf32> to vector<8x128xf32>
    %99 = vector.extract_strided_slice %78 {offsets = [0, 256], sizes = [8, 128], strides = [1, 1]} : vector<8x384xf32> to vector<8x128xf32>
    %100 = arith.addf %99, %5 : vector<8x128xf32>
    %101 = arith.mulf %87, %100 : vector<8x128xf32>
    %102 = arith.addf %98, %101 : vector<8x128xf32>
    %103 = math.tanh %102 : vector<8x128xf32>
    %cst_49 = arith.constant 1.000000e+00 : f32
    %104 = vector.broadcast %cst_49 : f32 to vector<8x128xf32>
    %105 = arith.subf %104, %96 : vector<8x128xf32>
    %106 = arith.mulf %105, %103 : vector<8x128xf32>
    %107 = arith.mulf %96, %73 : vector<8x128xf32>
    %108 = arith.addf %106, %107 : vector<8x128xf32>
    %c2_50 = arith.constant 2 : index
    %c0_51 = arith.constant 0 : index
    %c0_52 = arith.constant 0 : index
    %109 = vector.load %arg5[%c2_50, %c0_51, %c0_52] : memref<8x8x128xf32, #tpu.memory_space<vmem>>, vector<1x8x128xf32>
    %110 = vector.shape_cast %109 : vector<1x8x128xf32> to vector<8x128xf32>
    %111 = vector.shape_cast %108 : vector<8x128xf32> to vector<1x8x128xf32>
    tpu.vector_store %arg5[%c2_50, %c0_51, %c0_52], %111 {strides = array<i32>} : memref<8x8x128xf32, #tpu.memory_space<vmem>>, vector<1x8x128xf32>,
    %c0_53 = arith.constant 0 : index
    %c0_54 = arith.constant 0 : index
    %112 = vector.load %arg3[%c0_53, %c0_54] : memref<128x384xf32, #tpu.memory_space<vmem>>, vector<128x384xf32>
    %cst_55 = arith.constant dense<0.000000e+00> : vector<8x384xf32>
    %113 = tpu.matmul %108, %112, %cst_55 {dimension_numbers = #tpu.dot_dimension_numbers<[1], [0], [0], [1], [0, 0, 1, 1], [], []>} : vector<8x128xf32>, vector<128x384xf32>, vector<8x384xf32> -> vector<8x384xf32>
    %c3 = arith.constant 3 : index
    %c0_56 = arith.constant 0 : index
    %c0_57 = arith.constant 0 : index
    %114 = vector.load %arg2[%c3, %c0_56, %c0_57] : memref<8x8x384xf32, #tpu.memory_space<vmem>>, vector<1x8x128xf32>
    %115 = vector.shape_cast %114 : vector<1x8x128xf32> to vector<8x128xf32>
    %116 = vector.extract_strided_slice %113 {offsets = [0, 0], sizes = [8, 128], strides = [1, 1]} : vector<8x384xf32> to vector<8x128xf32>
    %117 = arith.addf %115, %116 : vector<8x128xf32>
    %118 = arith.negf %117 : vector<8x128xf32>
    %119 = math.exp %118 : vector<8x128xf32>
    %cst_58 = arith.constant 1.000000e+00 : f32
    %120 = vector.broadcast %cst_58 : f32 to vector<8x128xf32>
    %121 = arith.addf %120, %119 : vector<8x128xf32>
    %122 = arith.divf %120, %121 : vector<8x128xf32>
    %c3_59 = arith.constant 3 : index
    %c0_60 = arith.constant 0 : index
    %c128_61 = arith.constant 128 : index
    %123 = vector.load %arg2[%c3_59, %c0_60, %c128_61] : memref<8x8x384xf32, #tpu.memory_space<vmem>>, vector<1x8x128xf32>
    %124 = vector.shape_cast %123 : vector<1x8x128xf32> to vector<8x128xf32>
    %125 = vector.extract_strided_slice %113 {offsets = [0, 128], sizes = [8, 128], strides = [1, 1]} : vector<8x384xf32> to vector<8x128xf32>
    %126 = arith.addf %124, %125 : vector<8x128xf32>
    %127 = arith.negf %126 : vector<8x128xf32>
    %128 = math.exp %127 : vector<8x128xf32>
    %cst_62 = arith.constant 1.000000e+00 : f32
    %129 = vector.broadcast %cst_62 : f32 to vector<8x128xf32>
    %130 = arith.addf %129, %128 : vector<8x128xf32>
    %131 = arith.divf %129, %130 : vector<8x128xf32>
    %c3_63 = arith.constant 3 : index
    %c0_64 = arith.constant 0 : index
    %c256_65 = arith.constant 256 : index
    %132 = vector.load %arg2[%c3_63, %c0_64, %c256_65] : memref<8x8x384xf32, #tpu.memory_space<vmem>>, vector<1x8x128xf32>
    %133 = vector.shape_cast %132 : vector<1x8x128xf32> to vector<8x128xf32>
    %134 = vector.extract_strided_slice %113 {offsets = [0, 256], sizes = [8, 128], strides = [1, 1]} : vector<8x384xf32> to vector<8x128xf32>
    %135 = arith.addf %134, %5 : vector<8x128xf32>
    %136 = arith.mulf %122, %135 : vector<8x128xf32>
    %137 = arith.addf %133, %136 : vector<8x128xf32>
    %138 = math.tanh %137 : vector<8x128xf32>
    %cst_66 = arith.constant 1.000000e+00 : f32
    %139 = vector.broadcast %cst_66 : f32 to vector<8x128xf32>
    %140 = arith.subf %139, %131 : vector<8x128xf32>
    %141 = arith.mulf %140, %138 : vector<8x128xf32>
    %142 = arith.mulf %131, %108 : vector<8x128xf32>
    %143 = arith.addf %141, %142 : vector<8x128xf32>
    %c3_67 = arith.constant 3 : index
    %c0_68 = arith.constant 0 : index
    %c0_69 = arith.constant 0 : index
    %144 = vector.load %arg5[%c3_67, %c0_68, %c0_69] : memref<8x8x128xf32, #tpu.memory_space<vmem>>, vector<1x8x128xf32>
    %145 = vector.shape_cast %144 : vector<1x8x128xf32> to vector<8x128xf32>
    %146 = vector.shape_cast %143 : vector<8x128xf32> to vector<1x8x128xf32>
    tpu.vector_store %arg5[%c3_67, %c0_68, %c0_69], %146 {strides = array<i32>} : memref<8x8x128xf32, #tpu.memory_space<vmem>>, vector<1x8x128xf32>,
    %c0_70 = arith.constant 0 : index
    %c0_71 = arith.constant 0 : index
    %147 = vector.load %arg3[%c0_70, %c0_71] : memref<128x384xf32, #tpu.memory_space<vmem>>, vector<128x384xf32>
    %cst_72 = arith.constant dense<0.000000e+00> : vector<8x384xf32>
    %148 = tpu.matmul %143, %147, %cst_72 {dimension_numbers = #tpu.dot_dimension_numbers<[1], [0], [0], [1], [0, 0, 1, 1], [], []>} : vector<8x128xf32>, vector<128x384xf32>, vector<8x384xf32> -> vector<8x384xf32>
    %c4 = arith.constant 4 : index
    %c0_73 = arith.constant 0 : index
    %c0_74 = arith.constant 0 : index
    %149 = vector.load %arg2[%c4, %c0_73, %c0_74] : memref<8x8x384xf32, #tpu.memory_space<vmem>>, vector<1x8x128xf32>
    %150 = vector.shape_cast %149 : vector<1x8x128xf32> to vector<8x128xf32>
    %151 = vector.extract_strided_slice %148 {offsets = [0, 0], sizes = [8, 128], strides = [1, 1]} : vector<8x384xf32> to vector<8x128xf32>
    %152 = arith.addf %150, %151 : vector<8x128xf32>
    %153 = arith.negf %152 : vector<8x128xf32>
    %154 = math.exp %153 : vector<8x128xf32>
    %cst_75 = arith.constant 1.000000e+00 : f32
    %155 = vector.broadcast %cst_75 : f32 to vector<8x128xf32>
    %156 = arith.addf %155, %154 : vector<8x128xf32>
    %157 = arith.divf %155, %156 : vector<8x128xf32>
    %c4_76 = arith.constant 4 : index
    %c0_77 = arith.constant 0 : index
    %c128_78 = arith.constant 128 : index
    %158 = vector.load %arg2[%c4_76, %c0_77, %c128_78] : memref<8x8x384xf32, #tpu.memory_space<vmem>>, vector<1x8x128xf32>
    %159 = vector.shape_cast %158 : vector<1x8x128xf32> to vector<8x128xf32>
    %160 = vector.extract_strided_slice %148 {offsets = [0, 128], sizes = [8, 128], strides = [1, 1]} : vector<8x384xf32> to vector<8x128xf32>
    %161 = arith.addf %159, %160 : vector<8x128xf32>
    %162 = arith.negf %161 : vector<8x128xf32>
    %163 = math.exp %162 : vector<8x128xf32>
    %cst_79 = arith.constant 1.000000e+00 : f32
    %164 = vector.broadcast %cst_79 : f32 to vector<8x128xf32>
    %165 = arith.addf %164, %163 : vector<8x128xf32>
    %166 = arith.divf %164, %165 : vector<8x128xf32>
    %c4_80 = arith.constant 4 : index
    %c0_81 = arith.constant 0 : index
    %c256_82 = arith.constant 256 : index
    %167 = vector.load %arg2[%c4_80, %c0_81, %c256_82] : memref<8x8x384xf32, #tpu.memory_space<vmem>>, vector<1x8x128xf32>
    %168 = vector.shape_cast %167 : vector<1x8x128xf32> to vector<8x128xf32>
    %169 = vector.extract_strided_slice %148 {offsets = [0, 256], sizes = [8, 128], strides = [1, 1]} : vector<8x384xf32> to vector<8x128xf32>
    %170 = arith.addf %169, %5 : vector<8x128xf32>
    %171 = arith.mulf %157, %170 : vector<8x128xf32>
    %172 = arith.addf %168, %171 : vector<8x128xf32>
    %173 = math.tanh %172 : vector<8x128xf32>
    %cst_83 = arith.constant 1.000000e+00 : f32
    %174 = vector.broadcast %cst_83 : f32 to vector<8x128xf32>
    %175 = arith.subf %174, %166 : vector<8x128xf32>
    %176 = arith.mulf %175, %173 : vector<8x128xf32>
    %177 = arith.mulf %166, %143 : vector<8x128xf32>
    %178 = arith.addf %176, %177 : vector<8x128xf32>
    %c4_84 = arith.constant 4 : index
    %c0_85 = arith.constant 0 : index
    %c0_86 = arith.constant 0 : index
    %179 = vector.load %arg5[%c4_84, %c0_85, %c0_86] : memref<8x8x128xf32, #tpu.memory_space<vmem>>, vector<1x8x128xf32>
    %180 = vector.shape_cast %179 : vector<1x8x128xf32> to vector<8x128xf32>
    %181 = vector.shape_cast %178 : vector<8x128xf32> to vector<1x8x128xf32>
    tpu.vector_store %arg5[%c4_84, %c0_85, %c0_86], %181 {strides = array<i32>} : memref<8x8x128xf32, #tpu.memory_space<vmem>>, vector<1x8x128xf32>,
    %c0_87 = arith.constant 0 : index
    %c0_88 = arith.constant 0 : index
    %182 = vector.load %arg3[%c0_87, %c0_88] : memref<128x384xf32, #tpu.memory_space<vmem>>, vector<128x384xf32>
    %cst_89 = arith.constant dense<0.000000e+00> : vector<8x384xf32>
    %183 = tpu.matmul %178, %182, %cst_89 {dimension_numbers = #tpu.dot_dimension_numbers<[1], [0], [0], [1], [0, 0, 1, 1], [], []>} : vector<8x128xf32>, vector<128x384xf32>, vector<8x384xf32> -> vector<8x384xf32>
    %c5 = arith.constant 5 : index
    %c0_90 = arith.constant 0 : index
    %c0_91 = arith.constant 0 : index
    %184 = vector.load %arg2[%c5, %c0_90, %c0_91] : memref<8x8x384xf32, #tpu.memory_space<vmem>>, vector<1x8x128xf32>
    %185 = vector.shape_cast %184 : vector<1x8x128xf32> to vector<8x128xf32>
    %186 = vector.extract_strided_slice %183 {offsets = [0, 0], sizes = [8, 128], strides = [1, 1]} : vector<8x384xf32> to vector<8x128xf32>
    %187 = arith.addf %185, %186 : vector<8x128xf32>
    %188 = arith.negf %187 : vector<8x128xf32>
    %189 = math.exp %188 : vector<8x128xf32>
    %cst_92 = arith.constant 1.000000e+00 : f32
    %190 = vector.broadcast %cst_92 : f32 to vector<8x128xf32>
    %191 = arith.addf %190, %189 : vector<8x128xf32>
    %192 = arith.divf %190, %191 : vector<8x128xf32>
    %c5_93 = arith.constant 5 : index
    %c0_94 = arith.constant 0 : index
    %c128_95 = arith.constant 128 : index
    %193 = vector.load %arg2[%c5_93, %c0_94, %c128_95] : memref<8x8x384xf32, #tpu.memory_space<vmem>>, vector<1x8x128xf32>
    %194 = vector.shape_cast %193 : vector<1x8x128xf32> to vector<8x128xf32>
    %195 = vector.extract_strided_slice %183 {offsets = [0, 128], sizes = [8, 128], strides = [1, 1]} : vector<8x384xf32> to vector<8x128xf32>
    %196 = arith.addf %194, %195 : vector<8x128xf32>
    %197 = arith.negf %196 : vector<8x128xf32>
    %198 = math.exp %197 : vector<8x128xf32>
    %cst_96 = arith.constant 1.000000e+00 : f32
    %199 = vector.broadcast %cst_96 : f32 to vector<8x128xf32>
    %200 = arith.addf %199, %198 : vector<8x128xf32>
    %201 = arith.divf %199, %200 : vector<8x128xf32>
    %c5_97 = arith.constant 5 : index
    %c0_98 = arith.constant 0 : index
    %c256_99 = arith.constant 256 : index
    %202 = vector.load %arg2[%c5_97, %c0_98, %c256_99] : memref<8x8x384xf32, #tpu.memory_space<vmem>>, vector<1x8x128xf32>
    %203 = vector.shape_cast %202 : vector<1x8x128xf32> to vector<8x128xf32>
    %204 = vector.extract_strided_slice %183 {offsets = [0, 256], sizes = [8, 128], strides = [1, 1]} : vector<8x384xf32> to vector<8x128xf32>
    %205 = arith.addf %204, %5 : vector<8x128xf32>
    %206 = arith.mulf %192, %205 : vector<8x128xf32>
    %207 = arith.addf %203, %206 : vector<8x128xf32>
    %208 = math.tanh %207 : vector<8x128xf32>
    %cst_100 = arith.constant 1.000000e+00 : f32
    %209 = vector.broadcast %cst_100 : f32 to vector<8x128xf32>
    %210 = arith.subf %209, %201 : vector<8x128xf32>
    %211 = arith.mulf %210, %208 : vector<8x128xf32>
    %212 = arith.mulf %201, %178 : vector<8x128xf32>
    %213 = arith.addf %211, %212 : vector<8x128xf32>
    %c5_101 = arith.constant 5 : index
    %c0_102 = arith.constant 0 : index
    %c0_103 = arith.constant 0 : index
    %214 = vector.load %arg5[%c5_101, %c0_102, %c0_103] : memref<8x8x128xf32, #tpu.memory_space<vmem>>, vector<1x8x128xf32>
    %215 = vector.shape_cast %214 : vector<1x8x128xf32> to vector<8x128xf32>
    %216 = vector.shape_cast %213 : vector<8x128xf32> to vector<1x8x128xf32>
    tpu.vector_store %arg5[%c5_101, %c0_102, %c0_103], %216 {strides = array<i32>} : memref<8x8x128xf32, #tpu.memory_space<vmem>>, vector<1x8x128xf32>,
    %c0_104 = arith.constant 0 : index
    %c0_105 = arith.constant 0 : index
    %217 = vector.load %arg3[%c0_104, %c0_105] : memref<128x384xf32, #tpu.memory_space<vmem>>, vector<128x384xf32>
    %cst_106 = arith.constant dense<0.000000e+00> : vector<8x384xf32>
    %218 = tpu.matmul %213, %217, %cst_106 {dimension_numbers = #tpu.dot_dimension_numbers<[1], [0], [0], [1], [0, 0, 1, 1], [], []>} : vector<8x128xf32>, vector<128x384xf32>, vector<8x384xf32> -> vector<8x384xf32>
    %c6 = arith.constant 6 : index
    %c0_107 = arith.constant 0 : index
    %c0_108 = arith.constant 0 : index
    %219 = vector.load %arg2[%c6, %c0_107, %c0_108] : memref<8x8x384xf32, #tpu.memory_space<vmem>>, vector<1x8x128xf32>
    %220 = vector.shape_cast %219 : vector<1x8x128xf32> to vector<8x128xf32>
    %221 = vector.extract_strided_slice %218 {offsets = [0, 0], sizes = [8, 128], strides = [1, 1]} : vector<8x384xf32> to vector<8x128xf32>
    %222 = arith.addf %220, %221 : vector<8x128xf32>
    %223 = arith.negf %222 : vector<8x128xf32>
    %224 = math.exp %223 : vector<8x128xf32>
    %cst_109 = arith.constant 1.000000e+00 : f32
    %225 = vector.broadcast %cst_109 : f32 to vector<8x128xf32>
    %226 = arith.addf %225, %224 : vector<8x128xf32>
    %227 = arith.divf %225, %226 : vector<8x128xf32>
    %c6_110 = arith.constant 6 : index
    %c0_111 = arith.constant 0 : index
    %c128_112 = arith.constant 128 : index
    %228 = vector.load %arg2[%c6_110, %c0_111, %c128_112] : memref<8x8x384xf32, #tpu.memory_space<vmem>>, vector<1x8x128xf32>
    %229 = vector.shape_cast %228 : vector<1x8x128xf32> to vector<8x128xf32>
    %230 = vector.extract_strided_slice %218 {offsets = [0, 128], sizes = [8, 128], strides = [1, 1]} : vector<8x384xf32> to vector<8x128xf32>
    %231 = arith.addf %229, %230 : vector<8x128xf32>
    %232 = arith.negf %231 : vector<8x128xf32>
    %233 = math.exp %232 : vector<8x128xf32>
    %cst_113 = arith.constant 1.000000e+00 : f32
    %234 = vector.broadcast %cst_113 : f32 to vector<8x128xf32>
    %235 = arith.addf %234, %233 : vector<8x128xf32>
    %236 = arith.divf %234, %235 : vector<8x128xf32>
    %c6_114 = arith.constant 6 : index
    %c0_115 = arith.constant 0 : index
    %c256_116 = arith.constant 256 : index
    %237 = vector.load %arg2[%c6_114, %c0_115, %c256_116] : memref<8x8x384xf32, #tpu.memory_space<vmem>>, vector<1x8x128xf32>
    %238 = vector.shape_cast %237 : vector<1x8x128xf32> to vector<8x128xf32>
    %239 = vector.extract_strided_slice %218 {offsets = [0, 256], sizes = [8, 128], strides = [1, 1]} : vector<8x384xf32> to vector<8x128xf32>
    %240 = arith.addf %239, %5 : vector<8x128xf32>
    %241 = arith.mulf %227, %240 : vector<8x128xf32>
    %242 = arith.addf %238, %241 : vector<8x128xf32>
    %243 = math.tanh %242 : vector<8x128xf32>
    %cst_117 = arith.constant 1.000000e+00 : f32
    %244 = vector.broadcast %cst_117 : f32 to vector<8x128xf32>
    %245 = arith.subf %244, %236 : vector<8x128xf32>
    %246 = arith.mulf %245, %243 : vector<8x128xf32>
    %247 = arith.mulf %236, %213 : vector<8x128xf32>
    %248 = arith.addf %246, %247 : vector<8x128xf32>
    %c6_118 = arith.constant 6 : index
    %c0_119 = arith.constant 0 : index
    %c0_120 = arith.constant 0 : index
    %249 = vector.load %arg5[%c6_118, %c0_119, %c0_120] : memref<8x8x128xf32, #tpu.memory_space<vmem>>, vector<1x8x128xf32>
    %250 = vector.shape_cast %249 : vector<1x8x128xf32> to vector<8x128xf32>
    %251 = vector.shape_cast %248 : vector<8x128xf32> to vector<1x8x128xf32>
    tpu.vector_store %arg5[%c6_118, %c0_119, %c0_120], %251 {strides = array<i32>} : memref<8x8x128xf32, #tpu.memory_space<vmem>>, vector<1x8x128xf32>,
    %c0_121 = arith.constant 0 : index
    %c0_122 = arith.constant 0 : index
    %252 = vector.load %arg3[%c0_121, %c0_122] : memref<128x384xf32, #tpu.memory_space<vmem>>, vector<128x384xf32>
    %cst_123 = arith.constant dense<0.000000e+00> : vector<8x384xf32>
    %253 = tpu.matmul %248, %252, %cst_123 {dimension_numbers = #tpu.dot_dimension_numbers<[1], [0], [0], [1], [0, 0, 1, 1], [], []>} : vector<8x128xf32>, vector<128x384xf32>, vector<8x384xf32> -> vector<8x384xf32>
    %c7 = arith.constant 7 : index
    %c0_124 = arith.constant 0 : index
    %c0_125 = arith.constant 0 : index
    %254 = vector.load %arg2[%c7, %c0_124, %c0_125] : memref<8x8x384xf32, #tpu.memory_space<vmem>>, vector<1x8x128xf32>
    %255 = vector.shape_cast %254 : vector<1x8x128xf32> to vector<8x128xf32>
    %256 = vector.extract_strided_slice %253 {offsets = [0, 0], sizes = [8, 128], strides = [1, 1]} : vector<8x384xf32> to vector<8x128xf32>
    %257 = arith.addf %255, %256 : vector<8x128xf32>
    %258 = arith.negf %257 : vector<8x128xf32>
    %259 = math.exp %258 : vector<8x128xf32>
    %cst_126 = arith.constant 1.000000e+00 : f32
    %260 = vector.broadcast %cst_126 : f32 to vector<8x128xf32>
    %261 = arith.addf %260, %259 : vector<8x128xf32>
    %262 = arith.divf %260, %261 : vector<8x128xf32>
    %c7_127 = arith.constant 7 : index
    %c0_128 = arith.constant 0 : index
    %c128_129 = arith.constant 128 : index
    %263 = vector.load %arg2[%c7_127, %c0_128, %c128_129] : memref<8x8x384xf32, #tpu.memory_space<vmem>>, vector<1x8x128xf32>
    %264 = vector.shape_cast %263 : vector<1x8x128xf32> to vector<8x128xf32>
    %265 = vector.extract_strided_slice %253 {offsets = [0, 128], sizes = [8, 128], strides = [1, 1]} : vector<8x384xf32> to vector<8x128xf32>
    %266 = arith.addf %264, %265 : vector<8x128xf32>
    %267 = arith.negf %266 : vector<8x128xf32>
    %268 = math.exp %267 : vector<8x128xf32>
    %cst_130 = arith.constant 1.000000e+00 : f32
    %269 = vector.broadcast %cst_130 : f32 to vector<8x128xf32>
    %270 = arith.addf %269, %268 : vector<8x128xf32>
    %271 = arith.divf %269, %270 : vector<8x128xf32>
    %c7_131 = arith.constant 7 : index
    %c0_132 = arith.constant 0 : index
    %c256_133 = arith.constant 256 : index
    %272 = vector.load %arg2[%c7_131, %c0_132, %c256_133] : memref<8x8x384xf32, #tpu.memory_space<vmem>>, vector<1x8x128xf32>
    %273 = vector.shape_cast %272 : vector<1x8x128xf32> to vector<8x128xf32>
    %274 = vector.extract_strided_slice %253 {offsets = [0, 256], sizes = [8, 128], strides = [1, 1]} : vector<8x384xf32> to vector<8x128xf32>
    %275 = arith.addf %274, %5 : vector<8x128xf32>
    %276 = arith.mulf %262, %275 : vector<8x128xf32>
    %277 = arith.addf %273, %276 : vector<8x128xf32>
    %278 = math.tanh %277 : vector<8x128xf32>
    %cst_134 = arith.constant 1.000000e+00 : f32
    %279 = vector.broadcast %cst_134 : f32 to vector<8x128xf32>
    %280 = arith.subf %279, %271 : vector<8x128xf32>
    %281 = arith.mulf %280, %278 : vector<8x128xf32>
    %282 = arith.mulf %271, %248 : vector<8x128xf32>
    %283 = arith.addf %281, %282 : vector<8x128xf32>
    %c7_135 = arith.constant 7 : index
    %c0_136 = arith.constant 0 : index
    %c0_137 = arith.constant 0 : index
    %284 = vector.load %arg5[%c7_135, %c0_136, %c0_137] : memref<8x8x128xf32, #tpu.memory_space<vmem>>, vector<1x8x128xf32>
    %285 = vector.shape_cast %284 : vector<1x8x128xf32> to vector<8x128xf32>
    %286 = vector.shape_cast %283 : vector<8x128xf32> to vector<1x8x128xf32>
    tpu.vector_store %arg5[%c7_135, %c0_136, %c0_137], %286 {strides = array<i32>} : memref<8x8x128xf32, #tpu.memory_space<vmem>>, vector<1x8x128xf32>,
    %c0_138 = arith.constant 0 : index
    %c0_139 = arith.constant 0 : index
    %287 = vector.load %arg6[%c0_138, %c0_139] : memref<8x128xf32, #tpu.memory_space<vmem>>, vector<8x128xf32>
    tpu.vector_store %arg6[%c0_138, %c0_139], %283 {strides = array<i32>} : memref<8x128xf32, #tpu.memory_space<vmem>>, vector<8x128xf32>,
    return
  }
  func.func @transform_0(%arg0: i32, %arg1: i32) -> (i32, i32, i32) {
    %c0_i32 = arith.constant 0 : i32
    %c0_i32_0 = arith.constant 0 : i32
    return %arg1, %arg0, %c0_i32 : i32, i32, i32
  }
  func.func @transform_1(%arg0: i32, %arg1: i32) -> (i32, i32) {
    %c0_i32 = arith.constant 0 : i32
    %c0_i32_0 = arith.constant 0 : i32
    %c0_i32_1 = arith.constant 0 : i32
    return %c0_i32, %c0_i32_0 : i32, i32
  }
  func.func @transform_2(%arg0: i32, %arg1: i32) -> (i32, i32) {
    %c0_i32 = arith.constant 0 : i32
    %c0_i32_0 = arith.constant 0 : i32
    %c0_i32_1 = arith.constant 0 : i32
    return %c0_i32, %c0_i32_0 : i32, i32
  }
  func.func @transform_3(%arg0: i32, %arg1: i32) -> (i32, i32, i32) {
    %c0_i32 = arith.constant 0 : i32
    %c0_i32_0 = arith.constant 0 : i32
    return %arg1, %arg0, %c0_i32 : i32, i32, i32
  }
}

</mosaic_0001>

<bundles_post_ra>
// kernel: tpu_custom_call.1
= control target key start
LH: loop header
LB: loop body
LE: loop exit
PB: predicated region body
PF: predicated region fallthrough
CT: control target
= control target key end

     0   :  { %8 = vsyncpa [#allocation4], 0  ;;  %s2222_s0 = inlined_call_operand.hbm [shape: f32[8,8,384], index: 0, kind: input, shape index: {}]   ;;  %s2223_s1 = inlined_call_operand.hbm [shape: f32[128,384], index: 1, kind: input, shape index: {}]   ;;  %s2224_s2 = inlined_call_operand.vmem [shape: f32[1,128], index: 2, kind: input, shape index: {}]   ;;  %s2225_s3 = inlined_call_operand.hbm [shape: f32[8,8,128], index: 3, kind: output, shape index: {}]  }
   0x1   :  { %9 = vsyncpa [#allocation7], 0 }
   0x2   :  { %10 = vsyncpa [#allocation5], 0  ;;  %s15_s14 = sshll.u32 %s2222_s0, 4  ;;  %s1556_s15 = smov [#allocation3]   ;;  %s16_s14 = int_to_ptr.hbm [resolvable:$true] %s15_s14 }
   0x3   :  { %s17_s16 = sshll.u32 %s1556_s15, 4  ;;  %s28_s19 = sshll.u32 %s2223_s1, 4  ;;  %s18_s16 = int_to_ptr.vmem [resolvable:$true] %s17_s16  ;;  %s29_s19 = int_to_ptr.hbm [resolvable:$true] %s28_s19 }
   0x4   :  { %s1557_s20 = smov 384   ;;  %s1558_s21 = smov 24  }
   0x5   :  { %23 = dma.hbm_to_vmem [thread:$0]  %s16_s14, 3072, %s18_s16, [#allocation4], %s1557_s20, %s1557_s20, %s1558_s21  }
   0x6   :  { %s1559_s22 = smov [#allocation6]  }
   0x7   :  { %s30_s23 = sshll.u32 %s1559_s22, 4  ;;  %s31_s23 = int_to_ptr.vmem [resolvable:$true] %s30_s23 }
   0x8   :  { %36 = dma.hbm_to_vmem [thread:$0]  %s29_s19, 6144, %s31_s23, [#allocation7], %s1557_s20, %s1557_s20, %s1558_s21  }
   0x9   :  { %1550 = dma.done.wait [#allocation4], 3072  }
   0xa   :  { %1551 = vsyncadd [#allocation4], 4294964224 }
   0xb   :  { %1552 = dma.done.wait [#allocation7], 6144  }
   0xc   :  { %1553 = vsyncadd [#allocation7], 4294961152  ;;  %v1590_v0 = vld [vmem:[#allocation6 + $0x168] sm:$0xff]  ;;  %v1592_v1 = vld [vmem:[#allocation6 + $0x170] sm:$0xff]  ;;  %v1560_v44 = vmov 0.0   ;;  %s1358_s29 = sshll.u32 %s2225_s3, 4  ;;  %s1359_s29 = int_to_ptr.hbm [resolvable:$true] %s1358_s29 }
   0xd   :  { %v1594_v2 = vld [vmem:[#allocation6 + $0x150] sm:$0xff]  ;;  %105 = vmatpush.msra.mxu0 %v1590_v0  ;;  %125 = vmatpush.msra.mxu1 %v1592_v1  ;;  %v1598_v3 = vld [vmem:[#allocation6 + $0x158] sm:$0xff]  ;;  %v1602_v5 = vld [vmem:[#allocation6 + $0x140] sm:$0xff]  ;;  %s1562_s30 = smov 128   ;;  %s1563_s4 = smov 8  }
   0xe   :  { %v1600_v4 = vld [vmem:[#allocation6 + $0x138] sm:$0xff]  ;;  %265 = vmatpush.msra.mxu3 %v1590_v0  ;;  %v1607_v6 = vld [vmem:[#allocation6 + $0x120] sm:$0xff]  ;;  %v1609_v7 = vld [vmem:[#allocation6 + $0x128] sm:$0xff] }
   0xf   :  { %106 = vmatpush.msra.mxu0 %v1594_v2  ;;  %126 = vmatpush.msra.mxu1 %v1598_v3  ;;  %v1614_v8 = vld [vmem:[#allocation6 + $0x108] sm:$0xff]  ;;  %v1616_v9 = vld [vmem:[#allocation6 + $0x110] sm:$0xff]  ;;  %v1623_v11 = vld [vmem:[#allocation6 + $0xf8] sm:$0xff] }
  0x10   :  { %266 = vmatpush.msra.mxu3 %v1594_v2  ;;  %v1621_v10 = vld [vmem:[#allocation6 + $0xf0] sm:$0xff]  ;;  %v1625_v12 = vld [vmem:[#allocation6 + $0x178] sm:$0xff]  ;;  %v1630_v13 = vld [vmem:[#allocation6 + $0x160] sm:$0xff] }
  0x11   :  { %107 = vmatpush.msra.mxu0 %v1600_v4  ;;  %127 = vmatpush.msra.mxu1 %v1602_v5  ;;  %v1632_v14 = vld [vmem:[#allocation6 + $0xd8] sm:$0xff]  ;;  %v1634_v15 = vld [vmem:[#allocation6 + $0xe0] sm:$0xff]  ;;  %v1640_v16 = vld [vmem:[#allocation6 + $0x148] sm:$0xff] }
  0x12   :  { %267 = vmatpush.msra.mxu3 %v1600_v4  ;;  %145 = vmatpush.msra.mxu2 %v1625_v12  ;;  %v1642_v17 = vld [vmem:[#allocation6 + $0xc0] sm:$0xff]  ;;  %v1644_v18 = vld [vmem:[#allocation6 + $0xc8] sm:$0xff]  ;;  %v1650_v19 = vld [vmem:[#allocation6 + $0x130] sm:$0xff] }
  0x13   :  { %108 = vmatpush.msra.mxu0 %v1607_v6  ;;  %128 = vmatpush.msra.mxu1 %v1609_v7  ;;  %v1652_v20 = vld [vmem:[#allocation6 + $0xa8] sm:$0xff]  ;;  %v1654_v21 = vld [vmem:[#allocation6 + $0xb0] sm:$0xff]  ;;  %v1660_v22 = vld [vmem:[#allocation6 + $0x118] sm:$0xff] }
  0x14   :  { %268 = vmatpush.msra.mxu3 %v1607_v6  ;;  %146 = vmatpush.msra.mxu2 %v1630_v13  ;;  %v1662_v23 = vld [vmem:[#allocation6 + $0x90] sm:$0xff]  ;;  %v1664_v24 = vld [vmem:[#allocation6 + $0x98] sm:$0xff]  ;;  %v1670_v25 = vld [vmem:[#allocation6 + $0x100] sm:$0xff] }
  0x15   :  { %109 = vmatpush.msra.mxu0 %v1614_v8  ;;  %129 = vmatpush.msra.mxu1 %v1616_v9  ;;  %v1672_v26 = vld [vmem:[#allocation6 + $0x78] sm:$0xff]  ;;  %v1674_v27 = vld [vmem:[#allocation6 + $0x80] sm:$0xff]  ;;  %v1680_v28 = vld [vmem:[#allocation6 + $0xe8] sm:$0xff] }
  0x16   :  { %269 = vmatpush.msra.mxu3 %v1614_v8  ;;  %147 = vmatpush.msra.mxu2 %v1640_v16  ;;  %v1682_v29 = vld [vmem:[#allocation6 + $0x60] sm:$0xff]  ;;  %v1684_v30 = vld [vmem:[#allocation6 + $0x68] sm:$0xff]  ;;  %v1690_v31 = vld [vmem:[#allocation6 + $0xd0] sm:$0xff] }
  0x17   :  { %110 = vmatpush.msra.mxu0 %v1621_v10  ;;  %130 = vmatpush.msra.mxu1 %v1623_v11  ;;  %v1692_v32 = vld [vmem:[#allocation6 + $0x48] sm:$0xff]  ;;  %v1694_v33 = vld [vmem:[#allocation6 + $0x50] sm:$0xff]  ;;  %v1700_v34 = vld [vmem:[#allocation6 + $0xb8] sm:$0xff] }
  0x18   :  { %270 = vmatpush.msra.mxu3 %v1621_v10  ;;  %148 = vmatpush.msra.mxu2 %v1650_v19  ;;  %v1702_v35 = vld [vmem:[#allocation6 + $0x30] sm:$0xff]  ;;  %v1704_v36 = vld [vmem:[#allocation6 + $0x38] sm:$0xff]  ;;  %v1710_v37 = vld [vmem:[#allocation6 + $0xa0] sm:$0xff] }
  0x19   :  { %111 = vmatpush.msra.mxu0 %v1632_v14  ;;  %131 = vmatpush.msra.mxu1 %v1634_v15  ;;  %v1712_v38 = vld [vmem:[#allocation6 + $0x18] sm:$0xff]  ;;  %v1714_v39 = vld [vmem:[#allocation6 + $0x20] sm:$0xff]  ;;  %v1720_v40 = vld [vmem:[#allocation6 + $0x88] sm:$0xff] }
  0x1a   :  { %271 = vmatpush.msra.mxu3 %v1632_v14  ;;  %149 = vmatpush.msra.mxu2 %v1660_v22  ;;  %v1722_v41 = vld [vmem:[#allocation6] sm:$0xff]  ;;  %v1724_v42 = vld [vmem:[#allocation6 + $0x8] sm:$0xff]  ;;  %v1731_v43 = vld [vmem:[#allocation6 + $0x70] sm:$0xff] }
  0x1b   :  { %112 = vmatpush.msra.mxu0 %v1642_v17  ;;  %132 = vmatpush.msra.mxu1 %v1644_v18  ;;  %v1736_v45 = vld [vmem:[#allocation6 + $0x58] sm:$0xff]  ;;  %v1740_v46 = vld [vmem:[#allocation6 + $0x40] sm:$0xff]  ;;  %v1746_v47 = vld [vmem:[#allocation6 + $0x28] sm:$0xff] }
  0x1c   :  { %272 = vmatpush.msra.mxu3 %v1642_v17  ;;  %150 = vmatpush.msra.mxu2 %v1670_v25  ;;  %v1752_v48 = vld [vmem:[#allocation6 + $0x10] sm:$0xff]  ;;  %v165_v49 = vld [vmem:[#allocation3] sm:$0xff]  ;;  %v186_v50 = vld [vmem:[#allocation3 + $0x8] sm:$0xff] }
  0x1d   :  { %113 = vmatpush.msra.mxu0 %v1652_v20  ;;  %133 = vmatpush.msra.mxu1 %v1654_v21 }
  0x1e   :  { %273 = vmatpush.msra.mxu3 %v1652_v20  ;;  %151 = vmatpush.msra.mxu2 %v1680_v28 }
  0x1f   :  { %114 = vmatpush.msra.mxu0 %v1662_v23  ;;  %134 = vmatpush.msra.mxu1 %v1664_v24 }
  0x20   :  { %274 = vmatpush.msra.mxu3 %v1662_v23  ;;  %152 = vmatpush.msra.mxu2 %v1690_v31 }
  0x21   :  { %115 = vmatpush.msra.mxu0 %v1672_v26  ;;  %135 = vmatpush.msra.mxu1 %v1674_v27 }
  0x22   :  { %275 = vmatpush.msra.mxu3 %v1672_v26  ;;  %153 = vmatpush.msra.mxu2 %v1700_v34 }
  0x23   :  { %116 = vmatpush.msra.mxu0 %v1682_v29  ;;  %136 = vmatpush.msra.mxu1 %v1684_v30 }
  0x24   :  { %276 = vmatpush.msra.mxu3 %v1682_v29  ;;  %154 = vmatpush.msra.mxu2 %v1710_v37 }
  0x25   :  { %117 = vmatpush.msra.mxu0 %v1692_v32  ;;  %137 = vmatpush.msra.mxu1 %v1694_v33 }
  0x26   :  { %277 = vmatpush.msra.mxu3 %v1692_v32  ;;  %155 = vmatpush.msra.mxu2 %v1720_v40 }
  0x27   :  { %118 = vmatpush.msra.mxu0 %v1702_v35  ;;  %138 = vmatpush.msra.mxu1 %v1704_v36 }
  0x28   :  { %278 = vmatpush.msra.mxu3 %v1702_v35  ;;  %156 = vmatpush.msra.mxu2 %v1731_v43 }
  0x29   :  { %119 = vmatpush.msra.mxu0 %v1712_v38  ;;  %139 = vmatpush.msra.mxu1 %v1714_v39 }
  0x2a   :  { %279 = vmatpush.msra.mxu3 %v1712_v38  ;;  %157 = vmatpush.msra.mxu2 %v1736_v45 }
  0x2b   :  { %120 = vmatpush.msra.mxu0 %v1722_v41  ;;  %140 = vmatpush.msra.mxu1 %v1724_v42 }
  0x2c   :  { %121 = vmatmul.f32.vlgmr.msra.gmra.mxu0 %v1560_v44  ;;  %141 = vmatmul.f32.vlgmr.msra.gmra.mxu1 %v1560_v44 }
  0x2d   :  { %285 = vmatpush.msrb.mxu0 %v1592_v1  ;;  %305 = vmatpush.msrb.mxu1 %v1625_v12 }
  0x2e   :  { %280 = vmatpush.msra.mxu3 %v1722_v41  ;;  %158 = vmatpush.msra.mxu2 %v1740_v46 }
  0x2f   :  { %286 = vmatpush.msrb.mxu0 %v1598_v3  ;;  %306 = vmatpush.msrb.mxu1 %v1630_v13 }
  0x30   :  { %447 = vmatpush.msrb.mxu3 %v1592_v1  ;;  %159 = vmatpush.msra.mxu2 %v1746_v47 }
  0x31   :  { %287 = vmatpush.msrb.mxu0 %v1602_v5  ;;  %307 = vmatpush.msrb.mxu1 %v1640_v16 }
  0x32   :  { %448 = vmatpush.msrb.mxu3 %v1598_v3  ;;  %160 = vmatpush.msra.mxu2 %v1752_v48 }
  0x33   :  { %288 = vmatpush.msrb.mxu0 %v1609_v7  ;;  %308 = vmatpush.msrb.mxu1 %v1650_v19 }
  0x34   :  { %449 = vmatpush.msrb.mxu3 %v1602_v5  ;;  %161 = vmatmul.f32.vlgmr.msra.gmra.mxu2 %v1560_v44 }
  0x35   :  { %289 = vmatpush.msrb.mxu0 %v1616_v9  ;;  %309 = vmatpush.msrb.mxu1 %v1660_v22 }
  0x36   :  { %427 = vmatpush.msrb.mxu2 %v1590_v0  ;;  %450 = vmatpush.msrb.mxu3 %v1609_v7 }
  0x37   :  { %290 = vmatpush.msrb.mxu0 %v1623_v11  ;;  %310 = vmatpush.msrb.mxu1 %v1670_v25 }
  0x38   :  { %428 = vmatpush.msrb.mxu2 %v1594_v2  ;;  %451 = vmatpush.msrb.mxu3 %v1616_v9 }
  0x39   :  { %291 = vmatpush.msrb.mxu0 %v1634_v15  ;;  %311 = vmatpush.msrb.mxu1 %v1680_v28 }
  0x3a   :  { %429 = vmatpush.msrb.mxu2 %v1600_v4  ;;  %452 = vmatpush.msrb.mxu3 %v1623_v11 }
  0x3b   :  { %292 = vmatpush.msrb.mxu0 %v1644_v18  ;;  %312 = vmatpush.msrb.mxu1 %v1690_v31 }
  0x3c   :  { %430 = vmatpush.msrb.mxu2 %v1607_v6  ;;  %453 = vmatpush.msrb.mxu3 %v1634_v15 }
  0x3d   :  { %293 = vmatpush.msrb.mxu0 %v1654_v21  ;;  %313 = vmatpush.msrb.mxu1 %v1700_v34 }
  0x3e   :  { %431 = vmatpush.msrb.mxu2 %v1614_v8  ;;  %454 = vmatpush.msrb.mxu3 %v1644_v18 }
  0x3f   :  { %294 = vmatpush.msrb.mxu0 %v1664_v24  ;;  %314 = vmatpush.msrb.mxu1 %v1710_v37 }
  0x40   :  { %432 = vmatpush.msrb.mxu2 %v1621_v10  ;;  %455 = vmatpush.msrb.mxu3 %v1654_v21 }
  0x41   :  { %295 = vmatpush.msrb.mxu0 %v1674_v27  ;;  %315 = vmatpush.msrb.mxu1 %v1720_v40 }
  0x42   :  { %433 = vmatpush.msrb.mxu2 %v1632_v14  ;;  %456 = vmatpush.msrb.mxu3 %v1664_v24 }
  0x43   :  { %296 = vmatpush.msrb.mxu0 %v1684_v30  ;;  %316 = vmatpush.msrb.mxu1 %v1731_v43 }
  0x44   :  { %434 = vmatpush.msrb.mxu2 %v1642_v17  ;;  %457 = vmatpush.msrb.mxu3 %v1674_v27 }
  0x45   :  { %297 = vmatpush.msrb.mxu0 %v1694_v33  ;;  %317 = vmatpush.msrb.mxu1 %v1736_v45 }
  0x46   :  { %435 = vmatpush.msrb.mxu2 %v1652_v20  ;;  %458 = vmatpush.msrb.mxu3 %v1684_v30 }
  0x47   :  { %298 = vmatpush.msrb.mxu0 %v1704_v36  ;;  %318 = vmatpush.msrb.mxu1 %v1740_v46 }
  0x48   :  { %436 = vmatpush.msrb.mxu2 %v1662_v23  ;;  %459 = vmatpush.msrb.mxu3 %v1694_v33 }
  0x49   :  { %299 = vmatpush.msrb.mxu0 %v1714_v39  ;;  %319 = vmatpush.msrb.mxu1 %v1746_v47 }
  0x4a   :  { %437 = vmatpush.msrb.mxu2 %v1672_v26  ;;  %460 = vmatpush.msrb.mxu3 %v1704_v36 }
  0x4b   :  { %300 = vmatpush.msrb.mxu0 %v1724_v42  ;;  %320 = vmatpush.msrb.mxu1 %v1752_v48 }
  0x4c   :  { %438 = vmatpush.msrb.mxu2 %v1682_v29  ;;  %461 = vmatpush.msrb.mxu3 %v1714_v39 }
  0x4d   :  { %467 = vmatpush.msra.mxu0 %v1625_v12  ;;  %589 = vmatpush.msra.mxu1 %v1590_v0 }
  0x4e   :  { %439 = vmatpush.msrb.mxu2 %v1692_v32  ;;  %462 = vmatpush.msrb.mxu3 %v1724_v42 }
  0x4f   :  { %468 = vmatpush.msra.mxu0 %v1630_v13  ;;  %590 = vmatpush.msra.mxu1 %v1594_v2 }
  0x50   :  { %440 = vmatpush.msrb.mxu2 %v1702_v35 }
  0x51   :  { %469 = vmatpush.msra.mxu0 %v1640_v16  ;;  %591 = vmatpush.msra.mxu1 %v1600_v4 }
  0x52   :  { %441 = vmatpush.msrb.mxu2 %v1712_v38 }
  0x53   :  { %470 = vmatpush.msra.mxu0 %v1650_v19  ;;  %592 = vmatpush.msra.mxu1 %v1607_v6 }
  0x54   :  { %442 = vmatpush.msrb.mxu2 %v1722_v41 }
  0x55   :  { %471 = vmatpush.msra.mxu0 %v1660_v22  ;;  %593 = vmatpush.msra.mxu1 %v1614_v8 }
  0x56   :  { %609 = vmatpush.msra.mxu2 %v1592_v1  ;;  %v1865_v1 = vld [vmem:[%s2224_s2] ss:$0 sm:$0xff] }
  0x57   :  { %472 = vmatpush.msra.mxu0 %v1670_v25  ;;  %594 = vmatpush.msra.mxu1 %v1621_v10 }
  0x58   :  { %610 = vmatpush.msra.mxu2 %v1598_v3 }
  0x59   :  { %473 = vmatpush.msra.mxu0 %v1680_v28  ;;  %595 = vmatpush.msra.mxu1 %v1632_v14 }
  0x5a   :  { %611 = vmatpush.msra.mxu2 %v1602_v5 }
  0x5b   :  { %474 = vmatpush.msra.mxu0 %v1690_v31  ;;  %596 = vmatpush.msra.mxu1 %v1642_v17 }
  0x5c   :  { %612 = vmatpush.msra.mxu2 %v1609_v7 }
  0x5d   :  { %475 = vmatpush.msra.mxu0 %v1700_v34  ;;  %597 = vmatpush.msra.mxu1 %v1652_v20 }
  0x5e   :  { %613 = vmatpush.msra.mxu2 %v1616_v9 }
  0x5f   :  { %476 = vmatpush.msra.mxu0 %v1710_v37  ;;  %598 = vmatpush.msra.mxu1 %v1662_v23 }
  0x60   :  { %614 = vmatpush.msra.mxu2 %v1623_v11 }
  0x61   :  { %477 = vmatpush.msra.mxu0 %v1720_v40  ;;  %599 = vmatpush.msra.mxu1 %v1672_v26 }
  0x62   :  { %615 = vmatpush.msra.mxu2 %v1634_v15 }
  0x63   :  { %478 = vmatpush.msra.mxu0 %v1731_v43  ;;  %600 = vmatpush.msra.mxu1 %v1682_v29 }
  0x64   :  { %616 = vmatpush.msra.mxu2 %v1644_v18  ;;  %v207_v18 = vld [vmem:[#allocation3 + $0x10] sm:$0xff] }
  0x65   :  { %479 = vmatpush.msra.mxu0 %v1736_v45  ;;  %601 = vmatpush.msra.mxu1 %v1692_v32 }
  0x66   :  { %617 = vmatpush.msra.mxu2 %v1654_v21 }
  0x67   :  { %480 = vmatpush.msra.mxu0 %v1740_v46  ;;  %602 = vmatpush.msra.mxu1 %v1702_v35 }
  0x68   :  { %618 = vmatpush.msra.mxu2 %v1664_v24 }
  0x69   :  { %481 = vmatpush.msra.mxu0 %v1746_v47  ;;  %603 = vmatpush.msra.mxu1 %v1712_v38 }
  0x6a   :  { %619 = vmatpush.msra.mxu2 %v1674_v27 }
  0x6b   :  { %482 = vmatpush.msra.mxu0 %v1752_v48  ;;  %604 = vmatpush.msra.mxu1 %v1722_v41 }
  0x6c   :  { %620 = vmatpush.msra.mxu2 %v1684_v30 }
  0x6e   :  { %621 = vmatpush.msra.mxu2 %v1694_v33 }
  0x70   :  { %622 = vmatpush.msra.mxu2 %v1704_v36 }
  0x72   :  { %623 = vmatpush.msra.mxu2 %v1714_v39 }
  0x74   :  { %624 = vmatpush.msra.mxu2 %v1724_v42 }
  0xa9   :  { %v122_v51 = vpop.f32.mrf.mxu0  ;;  %v142_v52 = vpop.f32.mrf.mxu1 }
  0xaa   :  { %v166_v53 = vadd.f32 %v165_v49, %v122_v51  ;;  %v187_v54 = vadd.f32 %v186_v50, %v142_v52 }
  0xac   :  { %v1372_v55 = vmul.f32 -1.442695, %v166_v53  ;;  %v1373_v56 = vmul.f32 -1.442695, %v187_v54 }
  0xae   :  { %1397 = vpow2.f32 %v1372_v55 }
  0xaf   :  { %1399 = vpow2.f32 %v1373_v56 }
  0xb4   :  { %v1398_v57 = vpop.eup %1397 }
  0xb5   :  { %v1400_v58 = vpop.eup %1399  ;;  %v170_v59 = vadd.f32 1.0, %v1398_v57  ;;  %v368_v57 = vld [vmem:[#allocation3 + $0x28] sm:$0xff] }
  0xb6   :  { %v191_v60 = vadd.f32 1.0, %v1400_v58 }
  0xb7   :  { %1401 = vrcp.f32 %v170_v59  ;;  %v162_v4 = vpop.f32.mrf.mxu2  ;;  %v182_v5 = vand.u32 2147483648, %v170_v59  ;;  %v180_v7 = vand.u32 2147483647, %v170_v59  ;;  %vm176_vm1 = vweird.f32 %v170_v59 }
  0xb8   :  { %1403 = vrcp.f32 %v191_v60  ;;  %v208_v10 = vadd.f32 %v1865_v1, %v162_v4  ;;  %vm197_vm4 = vweird.f32 %v191_v60  ;;  %v203_v20 = vand.u32 2147483648, %v191_v60 }
  0xb9   :  { %v183_v11 = vor.u32 1.1754944e-38, %v182_v5  ;;  %vm181_vm3 = vcmp.eq.f32.partialorder %v180_v7, 8.507059e+37  ;;  %v201_v23 = vand.u32 2147483647, %v191_v60  ;;  %v488_v7 = vld [vmem:[#allocation3 + $0x30] sm:$0xff] }
  0xba   :  { %v204_v27 = vor.u32 1.1754944e-38, %v203_v20 }
  0xbb   :  { %vm202_vm7 = vcmp.eq.f32.partialorder %v201_v23, 8.507059e+37 }
  0xbd   :  { %v1402_v61 = vpop.eup %1401 }
  0xbe   :  { %v1404_v62 = vpop.eup %1403  ;;  %v172_v63 = vmul.f32 %v1402_v61, %v170_v59  ;;  %vm177_vm0 = vweird.f32 %v1402_v61 }
  0xbf   :  { %v193_v0 = vmul.f32 %v1404_v62, %v191_v60  ;;  %vm178_vm2 = vmor %vm176_vm1, %vm177_vm0  ;;  %vm198_vm5 = vweird.f32 %v1404_v62 }
  0xc0   :  { %v173_v2 = vsub.f32 1.0, %v172_v63  ;;  %vm199_vm6 = vmor %vm197_vm4, %vm198_vm5 }
  0xc1   :  { %v194_v3 = vsub.f32 1.0, %v193_v0 }
  0xc2   :  { %v174_v6 = vmul.f32 %v1402_v61, %v173_v2 }
  0xc3   :  { %v195_v8 = vmul.f32 %v1404_v62, %v194_v3 }
  0xc4   :  { %v175_v9 = vadd.f32 %v1402_v61, %v174_v6 }
  0xc5   :  { %v196_v15 = vadd.f32 %v1404_v62, %v195_v8  ;;  %v509_v8 = vld [vmem:[#allocation3 + $0x38] sm:$0xff] }
  0xc6   :  { %v179_v14 = vsel %vm178_vm2, %v1402_v61, %v175_v9 }
  0xc7   :  { %v184_v17 = vsel %vm181_vm3, %v183_v11, %v179_v14  ;;  %v200_v26 = vsel %vm199_vm6, %v1404_v62, %v196_v15 }
  0xc8   :  { %v209_v21 = vmul.f32 %v208_v10, %v184_v17  ;;  %v205_v29 = vsel %vm202_vm7, %v204_v27, %v200_v26 }
  0xc9   :  { %v212_v30 = vsub.f32 1.0, %v205_v29  ;;  %v214_v35 = vmul.f32 0.0, %v205_v29 }
  0xca   :  { %v210_v24 = vadd.f32 %v209_v21, %v207_v18 }
  0xcc   :  { %1405 = vtanh.f32 %v210_v24 }
  0xd2   :  { %v1406_v32 = vpop.eup %1405 }
  0xd3   :  { %v213_v33 = vmul.f32 %v1406_v32, %v212_v30 }
  0xd5   :  { %v1868_v36 = vadd.f32 %v214_v35, %v213_v33 }
  0xd7   :  { %216 = vst [vmem:[#allocation8] sm:$0xff] %v1868_v36  ;;  %281 = vmatmul.f32.vlgmr.msra.gmra.mxu3 %v1868_v36  ;;  %301 = vmatmul.f32.vlgmr.msrb.gmra.mxu0 %v1868_v36 }
  0xd8   :  { %321 = vmatmul.f32.vlgmr.msrb.gmra.mxu1 %v1868_v36  ;;  %629 = vmatpush.msra.mxu3 %v1625_v12  ;;  %v347_v12 = vld [vmem:[#allocation3 + $0x20] sm:$0xff] }
  0xda   :  { %630 = vmatpush.msra.mxu3 %v1630_v13 }
  0xdc   :  { %631 = vmatpush.msra.mxu3 %v1640_v16 }
  0xde   :  { %632 = vmatpush.msra.mxu3 %v1650_v19 }
  0xe0   :  { %633 = vmatpush.msra.mxu3 %v1660_v22  ;;  %v326_v22 = vld [vmem:[#allocation3 + $0x18] sm:$0xff] }
  0xe2   :  { %634 = vmatpush.msra.mxu3 %v1670_v25 }
  0xe4   :  { %635 = vmatpush.msra.mxu3 %v1680_v28 }
  0xe6   :  { %636 = vmatpush.msra.mxu3 %v1690_v31 }
  0xe8   :  { %637 = vmatpush.msra.mxu3 %v1700_v34 }
  0xea   :  { %638 = vmatpush.msra.mxu3 %v1710_v37 }
  0xec   :  { %639 = vmatpush.msra.mxu3 %v1720_v40 }
  0xee   :  { %640 = vmatpush.msra.mxu3 %v1731_v43 }
  0xf0   :  { %641 = vmatpush.msra.mxu3 %v1736_v45 }
  0xf2   :  { %642 = vmatpush.msra.mxu3 %v1740_v46 }
  0xf4   :  { %643 = vmatpush.msra.mxu3 %v1746_v47 }
  0xf6   :  { %644 = vmatpush.msra.mxu3 %v1752_v48 }
 0x154   :  { %v302_v13 = vpop.f32.mrf.mxu0 }
 0x155   :  { %v348_v16 = vadd.f32 %v347_v12, %v302_v13  ;;  %v322_v50 = vpop.f32.mrf.mxu1 }
 0x156   :  { %v369_v53 = vadd.f32 %v1865_v1, %v322_v50  ;;  %v1901_v50 = vld [vmem:[#allocation6 + $0x170] sm:$0xff] }
 0x157   :  { %v1375_v19 = vmul.f32 -1.442695, %v348_v16  ;;  %771 = vmatpush.msrb.mxu1 %v1901_v50 }
 0x159   :  { %1407 = vpow2.f32 %v1375_v19 }
 0x15a   :  { %v282_v25 = vpop.f32.mrf.mxu3 }
 0x15b   :  { %v327_v28 = vadd.f32 %v326_v22, %v282_v25 }
 0x15d   :  { %v1374_v31 = vmul.f32 -1.442695, %v327_v28 }
 0x15f   :  { %v1408_v34 = vpop.eup %1407  ;;  %1409 = vpow2.f32 %v1374_v31 }
 0x160   :  { %v352_v37 = vadd.f32 1.0, %v1408_v34  ;;  %v530_v34 = vld [vmem:[#allocation3 + $0x40] sm:$0xff] }
 0x162   :  { %1411 = vrcp.f32 %v352_v37  ;;  %v364_v58 = vand.u32 2147483648, %v352_v37  ;;  %vm358_vm13 = vweird.f32 %v352_v37  ;;  %v362_v60 = vand.u32 2147483647, %v352_v37 }
 0x164   :  { %v365_v63 = vor.u32 1.1754944e-38, %v364_v58  ;;  %vm363_vm15 = vcmp.eq.f32.partialorder %v362_v60, 8.507059e+37  ;;  %v1928_v58 = vld [vmem:[#allocation6 + $0x120] sm:$0xff]  ;;  %v1932_v60 = vld [vmem:[#allocation6 + $0x130] sm:$0xff] }
 0x165   :  { %v1410_v38 = vpop.eup %1409 }
 0x166   :  { %v331_v39 = vadd.f32 1.0, %v1410_v38 }
 0x168   :  { %1413 = vrcp.f32 %v331_v39  ;;  %v1412_v40 = vpop.eup %1411  ;;  %v343_v46 = vand.u32 2147483648, %v331_v39  ;;  %v341_v48 = vand.u32 2147483647, %v331_v39  ;;  %vm337_vm9 = vweird.f32 %v331_v39 }
 0x169   :  { %v354_v41 = vmul.f32 %v1412_v40, %v352_v37  ;;  %vm359_vm12 = vweird.f32 %v1412_v40 }
 0x16a   :  { %v344_v52 = vor.u32 1.1754944e-38, %v343_v46  ;;  %vm342_vm11 = vcmp.eq.f32.partialorder %v341_v48, 8.507059e+37  ;;  %vm360_vm14 = vmor %vm358_vm13, %vm359_vm12 }
 0x16b   :  { %v355_v44 = vsub.f32 1.0, %v354_v41 }
 0x16d   :  { %v356_v49 = vmul.f32 %v1412_v40, %v355_v44 }
 0x16e   :  { %v1414_v42 = vpop.eup %1413 }
 0x16f   :  { %v333_v43 = vmul.f32 %v1414_v42, %v331_v39  ;;  %vm338_vm8 = vweird.f32 %v1414_v42  ;;  %v357_v55 = vadd.f32 %v1412_v40, %v356_v49  ;;  %v1899_v49 = vld [vmem:[#allocation6 + $0x168] sm:$0xff] }
 0x170   :  { %vm339_vm10 = vmor %vm337_vm9, %vm338_vm8  ;;  %751 = vmatpush.msrb.mxu0 %v1899_v49 }
 0x171   :  { %v334_v45 = vsub.f32 1.0, %v333_v43  ;;  %v361_v62 = vsel %vm360_vm14, %v1412_v40, %v357_v55  ;;  %v1918_v55 = vld [vmem:[#allocation6 + $0x138] sm:$0xff] }
 0x172   :  { %v366_v0 = vsel %vm363_vm15, %v365_v63, %v361_v62  ;;  %v1940_v62 = vld [vmem:[#allocation6 + $0x110] sm:$0xff]  ;;  %v1942_v63 = vld [vmem:[#allocation6 + $0x118] sm:$0xff] }
 0x173   :  { %v335_v47 = vmul.f32 %v1414_v42, %v334_v45  ;;  %v373_v2 = vsub.f32 1.0, %v366_v0  ;;  %v375_v5 = vmul.f32 %v366_v0, %v1868_v36  ;;  %v1948_v0 = vld [vmem:[#allocation6 + $0xf0] sm:$0xff] }
 0x175   :  { %v336_v51 = vadd.f32 %v1414_v42, %v335_v47 }
 0x177   :  { %v340_v54 = vsel %vm339_vm10, %v1414_v42, %v336_v51  ;;  %v1903_v51 = vld [vmem:[#allocation6 + $0x178] sm:$0xff] }
 0x178   :  { %v345_v56 = vsel %vm342_vm11, %v344_v52, %v340_v54  ;;  %v1908_v52 = vld [vmem:[#allocation6 + $0x150] sm:$0xff]  ;;  %v1912_v54 = vld [vmem:[#allocation6 + $0x160] sm:$0xff] }
 0x179   :  { %v370_v59 = vmul.f32 %v369_v53, %v345_v56  ;;  %v1910_v53 = vld [vmem:[#allocation6 + $0x158] sm:$0xff]  ;;  %752 = vmatpush.msrb.mxu0 %v1908_v52  ;;  %v1920_v56 = vld [vmem:[#allocation6 + $0x140] sm:$0xff] }
 0x17a   :  { %772 = vmatpush.msrb.mxu1 %v1910_v53 }
 0x17b   :  { %v371_v61 = vadd.f32 %v370_v59, %v368_v57  ;;  %v1922_v57 = vld [vmem:[#allocation6 + $0x148] sm:$0xff]  ;;  %753 = vmatpush.msrb.mxu0 %v1918_v55 }
 0x17c   :  { %773 = vmatpush.msrb.mxu1 %v1920_v56  ;;  %v1930_v59 = vld [vmem:[#allocation6 + $0x128] sm:$0xff] }
 0x17d   :  { %1415 = vtanh.f32 %v371_v61  ;;  %754 = vmatpush.msrb.mxu0 %v1928_v58  ;;  %v1938_v61 = vld [vmem:[#allocation6 + $0x108] sm:$0xff] }
 0x17e   :  { %774 = vmatpush.msrb.mxu1 %v1930_v59 }
 0x17f   :  { %755 = vmatpush.msrb.mxu0 %v1938_v61 }
 0x180   :  { %775 = vmatpush.msrb.mxu1 %v1940_v62 }
 0x181   :  { %756 = vmatpush.msrb.mxu0 %v1948_v0 }
 0x183   :  { %v1416_v3 = vpop.eup %1415 }
 0x184   :  { %v374_v4 = vmul.f32 %v1416_v3, %v373_v2  ;;  %v1950_v2 = vld [vmem:[#allocation6 + $0xf8] sm:$0xff]  ;;  %v1952_v3 = vld [vmem:[#allocation6 + $0x100] sm:$0xff] }
 0x185   :  { %2229 = vst [vmem:[#allocation12_spill] sm:$0xff] %v1950_v2  ;;  %776 = vmatpush.msrb.mxu1 %v1950_v2 }
 0x186   :  { %v376_v6 = vadd.f32 %v375_v5, %v374_v4  ;;  %v1958_v4 = vld [vmem:[#allocation6 + $0xd8] sm:$0xff]  ;;  %v1960_v5 = vld [vmem:[#allocation6 + $0xe0] sm:$0xff] }
 0x187   :  { %757 = vmatpush.msrb.mxu0 %v1958_v4  ;;  %777 = vmatpush.msrb.mxu1 %v1960_v5 }
 0x188   :  { %378 = vst [vmem:[#allocation8 + $0x8] sm:$0xff] %v376_v6  ;;  %443 = vmatmul.f32.vlgmr.msrb.gmra.mxu2 %v376_v6  ;;  %463 = vmatmul.f32.vlgmr.msrb.gmra.mxu3 %v376_v6 }
 0x189   :  { %483 = vmatmul.f32.vlgmr.msra.gmra.mxu0 %v376_v6  ;;  %791 = vmatpush.msrb.mxu2 %v1903_v51 }
 0x18a   :  { %913 = vmatpush.msrb.mxu3 %v1899_v49 }
 0x18b   :  { %792 = vmatpush.msrb.mxu2 %v1912_v54 }
 0x18c   :  { %914 = vmatpush.msrb.mxu3 %v1908_v52 }
 0x18d   :  { %793 = vmatpush.msrb.mxu2 %v1922_v57 }
 0x18e   :  { %915 = vmatpush.msrb.mxu3 %v1918_v55 }
 0x18f   :  { %794 = vmatpush.msrb.mxu2 %v1932_v60 }
 0x190   :  { %916 = vmatpush.msrb.mxu3 %v1928_v58 }
 0x191   :  { %795 = vmatpush.msrb.mxu2 %v1942_v63 }
 0x192   :  { %917 = vmatpush.msrb.mxu3 %v1938_v61 }
 0x193   :  { %796 = vmatpush.msrb.mxu2 %v1952_v3 }
 0x194   :  { %918 = vmatpush.msrb.mxu3 %v1948_v0 }
 0x196   :  { %919 = vmatpush.msrb.mxu3 %v1958_v4 }
 0x206   :  { %v484_v12 = vpop.f32.mrf.mxu0 }
 0x207   :  { %v531_v22 = vadd.f32 %v1865_v1, %v484_v12 }
 0x20b   :  { %v444_v9 = vpop.f32.mrf.mxu2  ;;  %v464_v10 = vpop.f32.mrf.mxu3 }
 0x20c   :  { %v489_v11 = vadd.f32 %v488_v7, %v444_v9  ;;  %v510_v14 = vadd.f32 %v509_v8, %v464_v10  ;;  %v1968_v7 = vld [vmem:[#allocation6 + $0xc0] sm:$0xff]  ;;  %v1970_v8 = vld [vmem:[#allocation6 + $0xc8] sm:$0xff]  ;;  %v1972_v9 = vld [vmem:[#allocation6 + $0xd0] sm:$0xff] }
 0x20d   :  { %v650_v10 = vld [vmem:[#allocation3 + $0x48] sm:$0xff]  ;;  %758 = vmatpush.msrb.mxu0 %v1968_v7  ;;  %778 = vmatpush.msrb.mxu1 %v1970_v8 }
 0x20e   :  { %v1376_v15 = vmul.f32 -1.442695, %v489_v11  ;;  %v1377_v17 = vmul.f32 -1.442695, %v510_v14  ;;  %v1978_v11 = vld [vmem:[#allocation6 + $0xa8] sm:$0xff]  ;;  %v1980_v14 = vld [vmem:[#allocation6 + $0xb0] sm:$0xff]  ;;  %920 = vmatpush.msrb.mxu3 %v1968_v7 }
 0x20f   :  { %759 = vmatpush.msrb.mxu0 %v1978_v11  ;;  %779 = vmatpush.msrb.mxu1 %v1980_v14 }
 0x210   :  { %1417 = vpow2.f32 %v1376_v15  ;;  %v1982_v15 = vld [vmem:[#allocation6 + $0xb8] sm:$0xff]  ;;  %921 = vmatpush.msrb.mxu3 %v1978_v11 }
 0x211   :  { %1419 = vpow2.f32 %v1377_v17 }
 0x216   :  { %v1418_v18 = vpop.eup %1417 }
 0x217   :  { %v1420_v20 = vpop.eup %1419  ;;  %v493_v21 = vadd.f32 1.0, %v1418_v18 }
 0x218   :  { %v514_v23 = vadd.f32 1.0, %v1420_v20  ;;  %v1988_v20 = vld [vmem:[#allocation6 + $0x90] sm:$0xff] }
 0x219   :  { %1421 = vrcp.f32 %v493_v21  ;;  %v505_v32 = vand.u32 2147483648, %v493_v21  ;;  %v503_v36 = vand.u32 2147483647, %v493_v21  ;;  %vm499_vm1 = vweird.f32 %v493_v21  ;;  %760 = vmatpush.msrb.mxu0 %v1988_v20  ;;  %922 = vmatpush.msrb.mxu3 %v1988_v20 }
 0x21a   :  { %1423 = vrcp.f32 %v514_v23  ;;  %v526_v38 = vand.u32 2147483648, %v514_v23  ;;  %vm520_vm5 = vweird.f32 %v514_v23  ;;  %v524_v39 = vand.u32 2147483647, %v514_v23 }
 0x21b   :  { %v506_v19 = vor.u32 1.1754944e-38, %v505_v32  ;;  %vm504_vm3 = vcmp.eq.f32.partialorder %v503_v36, 8.507059e+37  ;;  %v2008_v32 = vld [vmem:[#allocation6 + $0x60] sm:$0xff] }
 0x21c   :  { %v527_v42 = vor.u32 1.1754944e-38, %v526_v38  ;;  %vm525_vm7 = vcmp.eq.f32.partialorder %v524_v39, 8.507059e+37  ;;  %v2041_v38 = vld [vmem:[#allocation6 + $0x28] sm:$0xff] }
 0x21f   :  { %v1422_v24 = vpop.eup %1421 }
 0x220   :  { %v1424_v26 = vpop.eup %1423  ;;  %v495_v27 = vmul.f32 %v1422_v24, %v493_v21  ;;  %vm500_vm0 = vweird.f32 %v1422_v24  ;;  %v1990_v21 = vld [vmem:[#allocation6 + $0x98] sm:$0xff] }
 0x221   :  { %v516_v29 = vmul.f32 %v1424_v26, %v514_v23  ;;  %vm501_vm2 = vmor %vm499_vm1, %vm500_vm0  ;;  %vm521_vm4 = vweird.f32 %v1424_v26  ;;  %780 = vmatpush.msrb.mxu1 %v1990_v21  ;;  %v1995_v23 = vld [vmem:[#allocation6 + $0xa0] sm:$0xff] }
 0x222   :  { %v496_v30 = vsub.f32 1.0, %v495_v27  ;;  %vm522_vm6 = vmor %vm520_vm5, %vm521_vm4  ;;  %v2000_v27 = vld [vmem:[#allocation6 + $0x80] sm:$0xff] }
 0x223   :  { %v517_v33 = vsub.f32 1.0, %v516_v29  ;;  %v2002_v29 = vld [vmem:[#allocation6 + $0x88] sm:$0xff]  ;;  %781 = vmatpush.msrb.mxu1 %v2000_v27 }
 0x224   :  { %v497_v35 = vmul.f32 %v1422_v24, %v496_v30  ;;  %v671_v30 = vld [vmem:[#allocation3 + $0x50] sm:$0xff] }
 0x225   :  { %v518_v13 = vmul.f32 %v1424_v26, %v517_v33  ;;  %v2010_v33 = vld [vmem:[#allocation6 + $0x68] sm:$0xff] }
 0x226   :  { %v498_v16 = vadd.f32 %v1422_v24, %v497_v35  ;;  %v2012_v35 = vld [vmem:[#allocation6 + $0x70] sm:$0xff]  ;;  %782 = vmatpush.msrb.mxu1 %v2010_v33 }
 0x227   :  { %v519_v31 = vadd.f32 %v1424_v26, %v518_v13  ;;  %v2018_v13 = vld [vmem:[#allocation6 + $0x48] sm:$0xff] }
 0x228   :  { %v502_v25 = vsel %vm501_vm2, %v1422_v24, %v498_v16  ;;  %v2020_v16 = vld [vmem:[#allocation6 + $0x50] sm:$0xff] }
 0x229   :  { %v507_v28 = vsel %vm504_vm3, %v506_v19, %v502_v25  ;;  %v523_v41 = vsel %vm522_vm6, %v1424_v26, %v519_v31  ;;  %v1998_v26 = vld [vmem:[#allocation6 + $0x78] sm:$0xff]  ;;  %783 = vmatpush.msrb.mxu1 %v2020_v16  ;;  %v2028_v25 = vld [vmem:[#allocation6 + $0x30] sm:$0xff]  ;;  %v2032_v31 = vld [vmem:[#allocation6 + $0x40] sm:$0xff] }
 0x22a   :  { %v532_v37 = vmul.f32 %v531_v22, %v507_v28  ;;  %v528_v43 = vsel %vm525_vm7, %v527_v42, %v523_v41  ;;  %761 = vmatpush.msrb.mxu0 %v1998_v26  ;;  %923 = vmatpush.msrb.mxu3 %v1998_v26  ;;  %v2022_v19 = vld [vmem:[#allocation6 + $0x58] sm:$0xff]  ;;  %v2046_v41 = vld [vmem:[#allocation6 + $0x8] sm:$0xff] }
 0x22b   :  { %v535_v44 = vsub.f32 1.0, %v528_v43  ;;  %v537_v47 = vmul.f32 %v528_v43, %v376_v6  ;;  %v1962_v6 = vld [vmem:[#allocation6 + $0xe8] sm:$0xff]  ;;  %v2030_v28 = vld [vmem:[#allocation6 + $0x38] sm:$0xff]  ;;  %v2051_v43 = vld [vmem:[#allocation6 + $0x10] sm:$0xff] }
 0x22c   :  { %v533_v40 = vadd.f32 %v532_v37, %v530_v34  ;;  %2230 = vst [vmem:[#allocation13_spill] sm:$0xff] %v1962_v6  ;;  %797 = vmatpush.msrb.mxu2 %v1962_v6  ;;  %762 = vmatpush.msrb.mxu0 %v2008_v32  ;;  %v2037_v34 = vld [vmem:[#allocation6 + $0x18] sm:$0xff]  ;;  %v2039_v37 = vld [vmem:[#allocation6 + $0x20] sm:$0xff] }
 0x22d   :  { %924 = vmatpush.msrb.mxu3 %v2008_v32  ;;  %784 = vmatpush.msrb.mxu1 %v2030_v28 }
 0x22e   :  { %1425 = vtanh.f32 %v533_v40  ;;  %798 = vmatpush.msrb.mxu2 %v1972_v9  ;;  %763 = vmatpush.msrb.mxu0 %v2018_v13  ;;  %v2044_v40 = vld [vmem:[#allocation6] sm:$0xff] }
 0x22f   :  { %925 = vmatpush.msrb.mxu3 %v2018_v13  ;;  %785 = vmatpush.msrb.mxu1 %v2039_v37 }
 0x230   :  { %799 = vmatpush.msrb.mxu2 %v1982_v15  ;;  %764 = vmatpush.msrb.mxu0 %v2028_v25 }
 0x231   :  { %926 = vmatpush.msrb.mxu3 %v2028_v25  ;;  %786 = vmatpush.msrb.mxu1 %v2046_v41 }
 0x232   :  { %800 = vmatpush.msrb.mxu2 %v1995_v23  ;;  %765 = vmatpush.msrb.mxu0 %v2037_v34 }
 0x233   :  { %927 = vmatpush.msrb.mxu3 %v2037_v34 }
 0x234   :  { %v1426_v45 = vpop.eup %1425  ;;  %801 = vmatpush.msrb.mxu2 %v2002_v29  ;;  %766 = vmatpush.msrb.mxu0 %v2044_v40 }
 0x235   :  { %v536_v46 = vmul.f32 %v1426_v45, %v535_v44  ;;  %928 = vmatpush.msrb.mxu3 %v2044_v40 }
 0x236   :  { %802 = vmatpush.msrb.mxu2 %v2012_v35  ;;  %933 = vmatpush.msra.mxu0 %v1901_v50 }
 0x237   :  { %v1893_v48 = vadd.f32 %v537_v47, %v536_v46 }
 0x238   :  { %803 = vmatpush.msrb.mxu2 %v2022_v19  ;;  %934 = vmatpush.msra.mxu0 %v1910_v53 }
 0x239   :  { %540 = vst [vmem:[#allocation8 + $0x10] sm:$0xff] %v1893_v48  ;;  %605 = vmatmul.f32.vlgmr.msra.gmra.mxu1 %v1893_v48  ;;  %625 = vmatmul.f32.vlgmr.msra.gmra.mxu2 %v1893_v48 }
 0x23a   :  { %645 = vmatmul.f32.vlgmr.msra.gmra.mxu3 %v1893_v48  ;;  %804 = vmatpush.msrb.mxu2 %v2032_v31 }
 0x23b   :  { %953 = vmatpush.msra.mxu1 %v1903_v51  ;;  %1095 = vmatpush.msra.mxu3 %v1901_v50 }
 0x23c   :  { %805 = vmatpush.msrb.mxu2 %v2041_v38  ;;  %935 = vmatpush.msra.mxu0 %v1920_v56 }
 0x23d   :  { %954 = vmatpush.msra.mxu1 %v1912_v54  ;;  %1096 = vmatpush.msra.mxu3 %v1910_v53 }
 0x23e   :  { %806 = vmatpush.msrb.mxu2 %v2051_v43  ;;  %936 = vmatpush.msra.mxu0 %v1930_v59 }
 0x23f   :  { %955 = vmatpush.msra.mxu1 %v1922_v57  ;;  %1097 = vmatpush.msra.mxu3 %v1920_v56 }
 0x240   :  { %1075 = vmatpush.msra.mxu2 %v1899_v49  ;;  %937 = vmatpush.msra.mxu0 %v1940_v62 }
 0x241   :  { %956 = vmatpush.msra.mxu1 %v1932_v60  ;;  %1098 = vmatpush.msra.mxu3 %v1930_v59 }
 0x242   :  { %1076 = vmatpush.msra.mxu2 %v1908_v52  ;;  %938 = vmatpush.msra.mxu0 %v1950_v2 }
 0x243   :  { %957 = vmatpush.msra.mxu1 %v1942_v63  ;;  %1099 = vmatpush.msra.mxu3 %v1940_v62 }
 0x244   :  { %1077 = vmatpush.msra.mxu2 %v1918_v55  ;;  %939 = vmatpush.msra.mxu0 %v1960_v5 }
 0x245   :  { %958 = vmatpush.msra.mxu1 %v1952_v3  ;;  %1100 = vmatpush.msra.mxu3 %v1950_v2 }
 0x246   :  { %1078 = vmatpush.msra.mxu2 %v1928_v58  ;;  %940 = vmatpush.msra.mxu0 %v1970_v8 }
 0x247   :  { %959 = vmatpush.msra.mxu1 %v1962_v6  ;;  %1101 = vmatpush.msra.mxu3 %v1960_v5 }
 0x248   :  { %1079 = vmatpush.msra.mxu2 %v1938_v61  ;;  %941 = vmatpush.msra.mxu0 %v1980_v14 }
 0x249   :  { %960 = vmatpush.msra.mxu1 %v1972_v9  ;;  %1102 = vmatpush.msra.mxu3 %v1970_v8 }
 0x24a   :  { %1080 = vmatpush.msra.mxu2 %v1948_v0  ;;  %942 = vmatpush.msra.mxu0 %v1990_v21 }
 0x24b   :  { %961 = vmatpush.msra.mxu1 %v1982_v15  ;;  %1103 = vmatpush.msra.mxu3 %v1980_v14 }
 0x24c   :  { %1081 = vmatpush.msra.mxu2 %v1958_v4  ;;  %943 = vmatpush.msra.mxu0 %v2000_v27 }
 0x24d   :  { %962 = vmatpush.msra.mxu1 %v1995_v23  ;;  %1104 = vmatpush.msra.mxu3 %v1990_v21 }
 0x24e   :  { %1082 = vmatpush.msra.mxu2 %v1968_v7  ;;  %944 = vmatpush.msra.mxu0 %v2010_v33 }
 0x24f   :  { %963 = vmatpush.msra.mxu1 %v2002_v29  ;;  %1105 = vmatpush.msra.mxu3 %v2000_v27 }
 0x250   :  { %1083 = vmatpush.msra.mxu2 %v1978_v11  ;;  %945 = vmatpush.msra.mxu0 %v2020_v16 }
 0x251   :  { %964 = vmatpush.msra.mxu1 %v2012_v35  ;;  %1106 = vmatpush.msra.mxu3 %v2010_v33 }
 0x252   :  { %1084 = vmatpush.msra.mxu2 %v1988_v20  ;;  %946 = vmatpush.msra.mxu0 %v2030_v28 }
 0x253   :  { %965 = vmatpush.msra.mxu1 %v2022_v19  ;;  %1107 = vmatpush.msra.mxu3 %v2020_v16 }
 0x254   :  { %1085 = vmatpush.msra.mxu2 %v1998_v26  ;;  %947 = vmatpush.msra.mxu0 %v2039_v37 }
 0x255   :  { %966 = vmatpush.msra.mxu1 %v2032_v31  ;;  %1108 = vmatpush.msra.mxu3 %v2030_v28 }
 0x256   :  { %1086 = vmatpush.msra.mxu2 %v2008_v32  ;;  %948 = vmatpush.msra.mxu0 %v2046_v41 }
 0x257   :  { %967 = vmatpush.msra.mxu1 %v2041_v38  ;;  %1109 = vmatpush.msra.mxu3 %v2039_v37 }
 0x258   :  { %1087 = vmatpush.msra.mxu2 %v2018_v13 }
 0x259   :  { %968 = vmatpush.msra.mxu1 %v2051_v43  ;;  %1110 = vmatpush.msra.mxu3 %v2046_v41 }
 0x25a   :  { %1088 = vmatpush.msra.mxu2 %v2028_v25 }
 0x25c   :  { %1089 = vmatpush.msra.mxu2 %v2037_v34 }
 0x25e   :  { %1090 = vmatpush.msra.mxu2 %v2044_v40 }
 0x2b6   :  { %v606_v17 = vpop.f32.mrf.mxu1 }
 0x2b7   :  { %v651_v18 = vadd.f32 %v650_v10, %v606_v17 }
 0x2b9   :  { %v1378_v24 = vmul.f32 -1.442695, %v651_v18 }
 0x2bb   :  { %1427 = vpow2.f32 %v1378_v24 }
 0x2bc   :  { %v626_v36 = vpop.f32.mrf.mxu2 }
 0x2bd   :  { %v672_v12 = vadd.f32 %v671_v30, %v626_v36  ;;  %v646_v36 = vpop.f32.mrf.mxu3 }
 0x2bf   :  { %v1379_v22 = vmul.f32 -1.442695, %v672_v12 }
 0x2c1   :  { %v1428_v39 = vpop.eup %1427  ;;  %1429 = vpow2.f32 %v1379_v22 }
 0x2c2   :  { %v655_v42 = vadd.f32 1.0, %v1428_v39 }
 0x2c4   :  { %1431 = vrcp.f32 %v655_v42  ;;  %v667_v17 = vand.u32 2147483648, %v655_v42  ;;  %v665_v24 = vand.u32 2147483647, %v655_v42  ;;  %vm661_vm9 = vweird.f32 %v655_v42 }
 0x2c6   :  { %v668_v39 = vor.u32 1.1754944e-38, %v667_v17  ;;  %vm666_vm11 = vcmp.eq.f32.partialorder %v665_v24, 8.507059e+37 }
 0x2c7   :  { %v1430_v44 = vpop.eup %1429 }
 0x2c8   :  { %v2063_v45 = vadd.f32 1.0, %v1430_v44 }
 0x2ca   :  { %v1432_v46 = vpop.eup %1431  ;;  %1433 = vrcp.f32 %v2063_v45  ;;  %v688_v6 = vand.u32 2147483648, %v2063_v45  ;;  %vm682_vm13 = vweird.f32 %v2063_v45 }
 0x2cb   :  { %v657_v47 = vmul.f32 %v1432_v46, %v655_v42  ;;  %vm662_vm8 = vweird.f32 %v1432_v46 }
 0x2cc   :  { %vm663_vm10 = vmor %vm661_vm9, %vm662_vm8 }
 0x2cd   :  { %v658_v10 = vsub.f32 1.0, %v657_v47 }
 0x2cf   :  { %v659_v18 = vmul.f32 %v1432_v46, %v658_v10  ;;  %v693_v10 = vadd.f32 %v1865_v1, %v646_v36 }
 0x2d0   :  { %v1434_v30 = vpop.eup %1433 }
 0x2d1   :  { %v678_v12 = vmul.f32 %v1434_v30, %v2063_v45  ;;  %v660_v22 = vadd.f32 %v1432_v46, %v659_v18  ;;  %v692_v18 = vld [vmem:[#allocation3 + $0x58] sm:$0xff]  ;;  %vm683_vm12 = vweird.f32 %v1434_v30 }
 0x2d2   :  { %vm684_vm14 = vmor %vm682_vm13, %vm683_vm12 }
 0x2d3   :  { %v679_v44 = vsub.f32 1.0, %v678_v12  ;;  %v664_v47 = vsel %vm663_vm10, %v1432_v46, %v660_v22  ;;  %v686_v46 = vand.u32 2147483647, %v2063_v45  ;;  %v689_v12 = vor.u32 1.1754944e-38, %v688_v6 }
 0x2d4   :  { %v669_v42 = vsel %vm666_vm11, %v668_v39, %v664_v47 }
 0x2d5   :  { %v680_v17 = vmul.f32 %v1434_v30, %v679_v44  ;;  %v694_v2 = vmul.f32 %v693_v10, %v669_v42  ;;  %vm687_vm15 = vcmp.eq.f32.partialorder %v686_v46, 8.507059e+37 }
 0x2d7   :  { %v681_v24 = vadd.f32 %v1434_v30, %v680_v17  ;;  %v695_v36 = vadd.f32 %v694_v2, %v692_v18 }
 0x2d9   :  { %v685_v22 = vsel %vm684_vm14, %v1434_v30, %v681_v24  ;;  %1435 = vtanh.f32 %v695_v36 }
 0x2da   :  { %v690_v2 = vsel %vm687_vm15, %v689_v12, %v685_v22 }
 0x2db   :  { %v697_v6 = vsub.f32 1.0, %v690_v2  ;;  %v699_v39 = vmul.f32 %v690_v2, %v1893_v48  ;;  %v2231_v48 = vld [vmem:[#allocation13_spill] sm:$0xff] }
 0x2df   :  { %v1436_v45 = vpop.eup %1435 }
 0x2e0   :  { %v698_v30 = vmul.f32 %v1436_v45, %v697_v6 }
 0x2e2   :  { %v2124_v44 = vadd.f32 %v699_v39, %v698_v30 }
 0x2e4   :  { %702 = vst [vmem:[#allocation8 + $0x18] sm:$0xff] %v2124_v44  ;;  %767 = vmatmul.f32.vlgmr.msrb.gmra.mxu0 %v2124_v44  ;;  %787 = vmatmul.f32.vlgmr.msrb.gmra.mxu1 %v2124_v44 }
 0x2e5   :  { %807 = vmatmul.f32.vlgmr.msrb.gmra.mxu2 %v2124_v44  ;;  %1115 = vmatpush.msrb.mxu0 %v1903_v51 }
 0x2e6   :  { %1237 = vmatpush.msrb.mxu1 %v1899_v49  ;;  %1257 = vmatpush.msrb.mxu2 %v1901_v50  ;;  %v2232_v49 = vld [vmem:[#allocation12_spill] sm:$0xff] }
 0x2e7   :  { %1116 = vmatpush.msrb.mxu0 %v1912_v54  ;;  %v812_v50 = vld [vmem:[#allocation3 + $0x60] sm:$0xff] }
 0x2e8   :  { %1238 = vmatpush.msrb.mxu1 %v1908_v52  ;;  %1258 = vmatpush.msrb.mxu2 %v1910_v53  ;;  %v833_v52 = vld [vmem:[#allocation3 + $0x68] sm:$0xff] }
 0x2e9   :  { %1117 = vmatpush.msrb.mxu0 %v1922_v57 }
 0x2ea   :  { %1239 = vmatpush.msrb.mxu1 %v1918_v55  ;;  %1259 = vmatpush.msrb.mxu2 %v1920_v56 }
 0x2eb   :  { %1118 = vmatpush.msrb.mxu0 %v1932_v60 }
 0x2ec   :  { %1240 = vmatpush.msrb.mxu1 %v1928_v58  ;;  %1260 = vmatpush.msrb.mxu2 %v1930_v59 }
 0x2ed   :  { %1119 = vmatpush.msrb.mxu0 %v1942_v63 }
 0x2ee   :  { %1241 = vmatpush.msrb.mxu1 %v1938_v61  ;;  %1261 = vmatpush.msrb.mxu2 %v1940_v62 }
 0x2ef   :  { %1120 = vmatpush.msrb.mxu0 %v1952_v3 }
 0x2f0   :  { %1242 = vmatpush.msrb.mxu1 %v1948_v0  ;;  %1262 = vmatpush.msrb.mxu2 %v2232_v49 }
 0x2f1   :  { %1121 = vmatpush.msrb.mxu0 %v2231_v48 }
 0x2f2   :  { %1243 = vmatpush.msrb.mxu1 %v1958_v4  ;;  %1263 = vmatpush.msrb.mxu2 %v1960_v5 }
 0x2f3   :  { %1122 = vmatpush.msrb.mxu0 %v1972_v9 }
 0x2f4   :  { %1244 = vmatpush.msrb.mxu1 %v1968_v7  ;;  %1264 = vmatpush.msrb.mxu2 %v1970_v8 }
 0x2f5   :  { %1123 = vmatpush.msrb.mxu0 %v1982_v15 }
 0x2f6   :  { %1245 = vmatpush.msrb.mxu1 %v1978_v11  ;;  %1265 = vmatpush.msrb.mxu2 %v1980_v14 }
 0x2f7   :  { %1124 = vmatpush.msrb.mxu0 %v1995_v23 }
 0x2f8   :  { %1246 = vmatpush.msrb.mxu1 %v1988_v20  ;;  %1266 = vmatpush.msrb.mxu2 %v1990_v21 }
 0x2f9   :  { %1125 = vmatpush.msrb.mxu0 %v2002_v29 }
 0x2fa   :  { %1247 = vmatpush.msrb.mxu1 %v1998_v26  ;;  %1267 = vmatpush.msrb.mxu2 %v2000_v27 }
 0x2fb   :  { %1126 = vmatpush.msrb.mxu0 %v2012_v35 }
 0x2fc   :  { %1248 = vmatpush.msrb.mxu1 %v2008_v32  ;;  %1268 = vmatpush.msrb.mxu2 %v2010_v33 }
 0x2fd   :  { %1127 = vmatpush.msrb.mxu0 %v2022_v19 }
 0x2fe   :  { %1249 = vmatpush.msrb.mxu1 %v2018_v13  ;;  %1269 = vmatpush.msrb.mxu2 %v2020_v16 }
 0x2ff   :  { %1128 = vmatpush.msrb.mxu0 %v2032_v31 }
 0x300   :  { %1250 = vmatpush.msrb.mxu1 %v2028_v25  ;;  %1270 = vmatpush.msrb.mxu2 %v2030_v28 }
 0x301   :  { %1129 = vmatpush.msrb.mxu0 %v2041_v38 }
 0x302   :  { %1251 = vmatpush.msrb.mxu1 %v2037_v34  ;;  %1271 = vmatpush.msrb.mxu2 %v2039_v37 }
 0x303   :  { %1130 = vmatpush.msrb.mxu0 %v2051_v43 }
 0x304   :  { %1252 = vmatpush.msrb.mxu1 %v2044_v40  ;;  %1272 = vmatpush.msrb.mxu2 %v2046_v41  ;;  %v854_v41 = vld [vmem:[#allocation3 + $0x70] sm:$0xff] }
 0x361   :  { %v768_v53 = vpop.f32.mrf.mxu0  ;;  %v788_v55 = vpop.f32.mrf.mxu1 }
 0x362   :  { %v813_v56 = vadd.f32 %v812_v50, %v768_v53  ;;  %v834_v58 = vadd.f32 %v833_v52, %v788_v55  ;;  %v2213_v55 = vld [vmem:[%s2224_s2] ss:$0 sm:$0xff]  ;;  %s1561_s2 = smov [#allocation8]  }
 0x363   :  { %s1356_s26 = sshll.u32 %s1561_s2, 4  ;;  %s1357_s26 = int_to_ptr.vmem [resolvable:$true] %s1356_s26 }
 0x364   :  { %v1380_v59 = vmul.f32 -1.442695, %v813_v56  ;;  %v1381_v61 = vmul.f32 -1.442695, %v834_v58 }
 0x366   :  { %1437 = vpow2.f32 %v1380_v59 }
 0x367   :  { %1439 = vpow2.f32 %v1381_v61 }
 0x368   :  { %v808_v13 = vpop.f32.mrf.mxu2 }
 0x369   :  { %v855_v34 = vadd.f32 %v1865_v1, %v808_v13  ;;  %v1157_v13 = vld [vmem:[#allocation3 + $0x98] sm:$0xff] }
 0x36c   :  { %v1438_v62 = vpop.eup %1437 }
 0x36d   :  { %v1440_v0 = vpop.eup %1439  ;;  %v817_v4 = vadd.f32 1.0, %v1438_v62  ;;  %v1016_v62 = vld [vmem:[#allocation3 + $0x88] sm:$0xff] }
 0x36e   :  { %v838_v5 = vadd.f32 1.0, %v1440_v0 }
 0x36f   :  { %1441 = vrcp.f32 %v817_v4  ;;  %v829_v26 = vand.u32 2147483648, %v817_v4  ;;  %v827_v32 = vand.u32 2147483647, %v817_v4  ;;  %vm823_vm1 = vweird.f32 %v817_v4 }
 0x370   :  { %1443 = vrcp.f32 %v838_v5  ;;  %v850_v47 = vand.u32 2147483648, %v838_v5  ;;  %vm844_vm5 = vweird.f32 %v838_v5  ;;  %v848_v42 = vand.u32 2147483647, %v838_v5 }
 0x371   :  { %v830_v25 = vor.u32 1.1754944e-38, %v829_v26  ;;  %vm828_vm3 = vcmp.eq.f32.partialorder %v827_v32, 8.507059e+37 }
 0x372   :  { %v851_v46 = vor.u32 1.1754944e-38, %v850_v47  ;;  %vm849_vm7 = vcmp.eq.f32.partialorder %v848_v42, 8.507059e+37 }
 0x375   :  { %v1442_v7 = vpop.eup %1441 }
 0x376   :  { %v1444_v8 = vpop.eup %1443  ;;  %v819_v11 = vmul.f32 %v1442_v7, %v817_v4  ;;  %vm824_vm0 = vweird.f32 %v1442_v7 }
 0x377   :  { %v840_v14 = vmul.f32 %v1444_v8, %v838_v5  ;;  %vm825_vm2 = vmor %vm823_vm1, %vm824_vm0  ;;  %vm845_vm4 = vweird.f32 %v1444_v8 }
 0x378   :  { %v820_v20 = vsub.f32 1.0, %v819_v11  ;;  %vm846_vm6 = vmor %vm844_vm5, %vm845_vm4 }
 0x379   :  { %v841_v21 = vsub.f32 1.0, %v840_v14 }
 0x37a   :  { %v821_v27 = vmul.f32 %v1442_v7, %v820_v20 }
 0x37b   :  { %v842_v33 = vmul.f32 %v1444_v8, %v841_v21 }
 0x37c   :  { %v822_v16 = vadd.f32 %v1442_v7, %v821_v27 }
 0x37d   :  { %v843_v37 = vadd.f32 %v1444_v8, %v842_v33  ;;  %v1136_v33 = vld [vmem:[#allocation3 + $0x90] sm:$0xff] }
 0x37e   :  { %v826_v28 = vsel %vm825_vm2, %v1442_v7, %v822_v16 }
 0x37f   :  { %v831_v40 = vsel %vm828_vm3, %v830_v25, %v826_v28  ;;  %v847_v17 = vsel %vm846_vm6, %v1444_v8, %v843_v37 }
 0x380   :  { %v856_v10 = vmul.f32 %v855_v34, %v831_v40  ;;  %v852_v24 = vsel %vm849_vm7, %v851_v46, %v847_v17 }
 0x381   :  { %v859_v36 = vsub.f32 1.0, %v852_v24  ;;  %v861_v1 = vmul.f32 %v852_v24, %v2124_v44 }
 0x382   :  { %v857_v18 = vadd.f32 %v856_v10, %v854_v41 }
 0x384   :  { %1445 = vtanh.f32 %v857_v18 }
 0x38a   :  { %v1446_v12 = vpop.eup %1445 }
 0x38b   :  { %v860_v22 = vmul.f32 %v1446_v12, %v859_v36 }
 0x38d   :  { %v2188_v2 = vadd.f32 %v861_v1, %v860_v22 }
 0x38f   :  { %864 = vst [vmem:[#allocation8 + $0x20] sm:$0xff] %v2188_v2  ;;  %929 = vmatmul.f32.vlgmr.msrb.gmra.mxu3 %v2188_v2  ;;  %949 = vmatmul.f32.vlgmr.msra.gmra.mxu0 %v2188_v2 }
 0x390   :  { %969 = vmatmul.f32.vlgmr.msra.gmra.mxu1 %v2188_v2  ;;  %1277 = vmatpush.msrb.mxu3 %v1903_v51  ;;  %v995_v51 = vld [vmem:[#allocation3 + $0x80] sm:$0xff] }
 0x392   :  { %1278 = vmatpush.msrb.mxu3 %v1912_v54 }
 0x394   :  { %1279 = vmatpush.msrb.mxu3 %v1922_v57 }
 0x396   :  { %1280 = vmatpush.msrb.mxu3 %v1932_v60 }
 0x398   :  { %1281 = vmatpush.msrb.mxu3 %v1942_v63  ;;  %v974_v63 = vld [vmem:[#allocation3 + $0x78] sm:$0xff] }
 0x39a   :  { %1282 = vmatpush.msrb.mxu3 %v1952_v3 }
 0x39c   :  { %1283 = vmatpush.msrb.mxu3 %v2231_v48 }
 0x39e   :  { %1284 = vmatpush.msrb.mxu3 %v1972_v9 }
 0x3a0   :  { %1285 = vmatpush.msrb.mxu3 %v1982_v15 }
 0x3a2   :  { %1286 = vmatpush.msrb.mxu3 %v1995_v23 }
 0x3a4   :  { %1287 = vmatpush.msrb.mxu3 %v2002_v29 }
 0x3a6   :  { %1288 = vmatpush.msrb.mxu3 %v2012_v35 }
 0x3a8   :  { %1289 = vmatpush.msrb.mxu3 %v2022_v19 }
 0x3aa   :  { %1290 = vmatpush.msrb.mxu3 %v2032_v31 }
 0x3ac   :  { %1291 = vmatpush.msrb.mxu3 %v2041_v38 }
 0x3ae   :  { %1292 = vmatpush.msrb.mxu3 %v2051_v43 }
 0x40c   :  { %v950_v54 = vpop.f32.mrf.mxu0 }
 0x40d   :  { %v996_v57 = vadd.f32 %v995_v51, %v950_v54  ;;  %v970_v50 = vpop.f32.mrf.mxu1 }
 0x40e   :  { %v1017_v56 = vadd.f32 %v2213_v55, %v970_v50 }
 0x40f   :  { %v1383_v60 = vmul.f32 -1.442695, %v996_v57 }
 0x411   :  { %1447 = vpow2.f32 %v1383_v60 }
 0x412   :  { %v930_v3 = vpop.f32.mrf.mxu3 }
 0x413   :  { %v975_v9 = vadd.f32 %v974_v63, %v930_v3 }
 0x415   :  { %v1382_v15 = vmul.f32 -1.442695, %v975_v9 }
 0x417   :  { %v1448_v23 = vpop.eup %1447  ;;  %1449 = vpow2.f32 %v1382_v15 }
 0x418   :  { %v1000_v29 = vadd.f32 1.0, %v1448_v23  ;;  %v1178_v23 = vld [vmem:[#allocation3 + $0xa0] sm:$0xff] }
 0x41a   :  { %1451 = vrcp.f32 %v1000_v29  ;;  %v1012_v0 = vand.u32 2147483648, %v1000_v29  ;;  %vm1006_vm13 = vweird.f32 %v1000_v29  ;;  %v1010_v5 = vand.u32 2147483647, %v1000_v29 }
 0x41c   :  { %v1013_v11 = vor.u32 1.1754944e-38, %v1012_v0  ;;  %vm1011_vm15 = vcmp.eq.f32.partialorder %v1010_v5, 8.507059e+37 }
 0x41d   :  { %v1450_v35 = vpop.eup %1449 }
 0x41e   :  { %v979_v19 = vadd.f32 1.0, %v1450_v35 }
 0x420   :  { %1453 = vrcp.f32 %v979_v19  ;;  %v1452_v31 = vpop.eup %1451  ;;  %v991_v39 = vand.u32 2147483648, %v979_v19  ;;  %v989_v48 = vand.u32 2147483647, %v979_v19  ;;  %vm985_vm9 = vweird.f32 %v979_v19 }
 0x421   :  { %v1002_v38 = vmul.f32 %v1452_v31, %v1000_v29  ;;  %vm1007_vm12 = vweird.f32 %v1452_v31 }
 0x422   :  { %v992_v53 = vor.u32 1.1754944e-38, %v991_v39  ;;  %vm990_vm11 = vcmp.eq.f32.partialorder %v989_v48, 8.507059e+37  ;;  %vm1008_vm14 = vmor %vm1006_vm13, %vm1007_vm12 }
 0x423   :  { %v1003_v45 = vsub.f32 1.0, %v1002_v38 }
 0x425   :  { %v1004_v49 = vmul.f32 %v1452_v31, %v1003_v45 }
 0x426   :  { %v1454_v6 = vpop.eup %1453 }
 0x427   :  { %v981_v43 = vmul.f32 %v1454_v6, %v979_v19  ;;  %vm986_vm8 = vweird.f32 %v1454_v6  ;;  %v1005_v59 = vadd.f32 %v1452_v31, %v1004_v49  ;;  %v1298_v49 = vld [vmem:[#allocation3 + $0xa8] sm:$0xff] }
 0x428   :  { %vm987_vm10 = vmor %vm985_vm9, %vm986_vm8 }
 0x429   :  { %v982_v30 = vsub.f32 1.0, %v981_v43  ;;  %v1009_v8 = vsel %vm1008_vm14, %v1452_v31, %v1005_v59 }
 0x42a   :  { %v1014_v14 = vsel %vm1011_vm15, %v1013_v11, %v1009_v8 }
 0x42b   :  { %v983_v44 = vmul.f32 %v1454_v6, %v982_v30  ;;  %v1021_v20 = vsub.f32 1.0, %v1014_v14  ;;  %v1023_v27 = vmul.f32 %v1014_v14, %v2188_v2 }
 0x42d   :  { %v984_v52 = vadd.f32 %v1454_v6, %v983_v44 }
 0x42f   :  { %v988_v58 = vsel %vm987_vm10, %v1454_v6, %v984_v52 }
 0x430   :  { %v993_v61 = vsel %vm990_vm11, %v992_v53, %v988_v58 }
 0x431   :  { %v1018_v4 = vmul.f32 %v1017_v56, %v993_v61  ;;  %v1319_v56 = vld [vmem:[#allocation3 + $0xb0] sm:$0xff] }
 0x433   :  { %v1019_v7 = vadd.f32 %v1018_v4, %v1016_v62 }
 0x435   :  { %1455 = vtanh.f32 %v1019_v7 }
 0x43b   :  { %v1456_v21 = vpop.eup %1455 }
 0x43c   :  { %v1022_v26 = vmul.f32 %v1456_v21, %v1021_v20 }
 0x43e   :  { %v1024_v32 = vadd.f32 %v1023_v27, %v1022_v26 }
 0x440   :  { %1026 = vst [vmem:[#allocation8 + $0x28] sm:$0xff] %v1024_v32  ;;  %1091 = vmatmul.f32.vlgmr.msra.gmra.mxu2 %v1024_v32  ;;  %1111 = vmatmul.f32.vlgmr.msra.gmra.mxu3 %v1024_v32 }
 0x441   :  { %1131 = vmatmul.f32.vlgmr.msrb.gmra.mxu0 %v1024_v32 }
 0x4be   :  { %v1132_v51 = vpop.f32.mrf.mxu0 }
 0x4bf   :  { %v1179_v63 = vadd.f32 %v2213_v55, %v1132_v51 }
 0x4c3   :  { %v1092_v16 = vpop.f32.mrf.mxu2  ;;  %v1112_v25 = vpop.f32.mrf.mxu3 }
 0x4c4   :  { %v1137_v28 = vadd.f32 %v1136_v33, %v1092_v16  ;;  %v1158_v34 = vadd.f32 %v1157_v13, %v1112_v25 }
 0x4c6   :  { %v1384_v37 = vmul.f32 -1.442695, %v1137_v28  ;;  %v1385_v40 = vmul.f32 -1.442695, %v1158_v34 }
 0x4c8   :  { %1457 = vpow2.f32 %v1384_v37  ;;  %v1340_v37 = vld [vmem:[#allocation3 + $0xb8] sm:$0xff] }
 0x4c9   :  { %1459 = vpow2.f32 %v1385_v40 }
 0x4ce   :  { %v1458_v41 = vpop.eup %1457 }
 0x4cf   :  { %v1460_v47 = vpop.eup %1459  ;;  %v1141_v10 = vadd.f32 1.0, %v1458_v41 }
 0x4d0   :  { %v1162_v42 = vadd.f32 1.0, %v1460_v47 }
 0x4d1   :  { %1461 = vrcp.f32 %v1141_v10  ;;  %v1153_v12 = vand.u32 2147483648, %v1141_v10  ;;  %v1151_v2 = vand.u32 2147483647, %v1141_v10  ;;  %vm1147_vm1 = vweird.f32 %v1141_v10 }
 0x4d2   :  { %1463 = vrcp.f32 %v1162_v42  ;;  %v1174_v35 = vand.u32 2147483648, %v1162_v42  ;;  %vm1168_vm5 = vweird.f32 %v1162_v42  ;;  %v1172_v19 = vand.u32 2147483647, %v1162_v42 }
 0x4d3   :  { %v1154_v60 = vor.u32 1.1754944e-38, %v1153_v12  ;;  %vm1152_vm3 = vcmp.eq.f32.partialorder %v1151_v2, 8.507059e+37 }
 0x4d4   :  { %v1175_v6 = vor.u32 1.1754944e-38, %v1174_v35  ;;  %vm1173_vm7 = vcmp.eq.f32.partialorder %v1172_v19, 8.507059e+37 }
 0x4d7   :  { %v1462_v18 = vpop.eup %1461 }
 0x4d8   :  { %v1464_v17 = vpop.eup %1463  ;;  %v1143_v46 = vmul.f32 %v1462_v18, %v1141_v10  ;;  %vm1148_vm0 = vweird.f32 %v1462_v18 }
 0x4d9   :  { %v1164_v24 = vmul.f32 %v1464_v17, %v1162_v42  ;;  %vm1149_vm2 = vmor %vm1147_vm1, %vm1148_vm0  ;;  %vm1169_vm4 = vweird.f32 %v1464_v17 }
 0x4da   :  { %v1144_v36 = vsub.f32 1.0, %v1143_v46  ;;  %vm1170_vm6 = vmor %vm1168_vm5, %vm1169_vm4 }
 0x4db   :  { %v1165_v22 = vsub.f32 1.0, %v1164_v24 }
 0x4dc   :  { %v1145_v1 = vmul.f32 %v1462_v18, %v1144_v36 }
 0x4dd   :  { %v1166_v54 = vmul.f32 %v1464_v17, %v1165_v22 }
 0x4de   :  { %v1146_v57 = vadd.f32 %v1462_v18, %v1145_v1 }
 0x4df   :  { %v1167_v15 = vadd.f32 %v1464_v17, %v1166_v54 }
 0x4e0   :  { %v1150_v3 = vsel %vm1149_vm2, %v1462_v18, %v1146_v57 }
 0x4e1   :  { %v1155_v9 = vsel %vm1152_vm3, %v1154_v60, %v1150_v3  ;;  %v1171_v38 = vsel %vm1170_vm6, %v1464_v17, %v1167_v15 }
 0x4e2   :  { %v1180_v29 = vmul.f32 %v1179_v63, %v1155_v9  ;;  %v1176_v43 = vsel %vm1173_vm7, %v1175_v6, %v1171_v38 }
 0x4e3   :  { %v1183_v45 = vsub.f32 1.0, %v1176_v43  ;;  %v1185_v44 = vmul.f32 %v1176_v43, %v1024_v32 }
 0x4e4   :  { %v1181_v31 = vadd.f32 %v1180_v29, %v1178_v23 }
 0x4e6   :  { %1465 = vtanh.f32 %v1181_v31 }
 0x4ec   :  { %v1466_v30 = vpop.eup %1465 }
 0x4ed   :  { %v1184_v39 = vmul.f32 %v1466_v30, %v1183_v45 }
 0x4ef   :  { %v1186_v48 = vadd.f32 %v1185_v44, %v1184_v39 }
 0x4f1   :  { %1188 = vst [vmem:[#allocation8 + $0x30] sm:$0xff] %v1186_v48  ;;  %1253 = vmatmul.f32.vlgmr.msrb.gmra.mxu1 %v1186_v48  ;;  %1273 = vmatmul.f32.vlgmr.msrb.gmra.mxu2 %v1186_v48 }
 0x4f2   :  { %1293 = vmatmul.f32.vlgmr.msrb.gmra.mxu3 %v1186_v48 }
 0x56e   :  { %v1254_v50 = vpop.f32.mrf.mxu1 }
 0x56f   :  { %v1299_v52 = vadd.f32 %v1298_v49, %v1254_v50 }
 0x571   :  { %v1386_v53 = vmul.f32 -1.442695, %v1299_v52 }
 0x573   :  { %1467 = vpow2.f32 %v1386_v53 }
 0x574   :  { %v1274_v58 = vpop.f32.mrf.mxu2 }
 0x575   :  { %v1320_v59 = vadd.f32 %v1319_v56, %v1274_v58  ;;  %v1294_v27 = vpop.f32.mrf.mxu3 }
 0x576   :  { %v1341_v28 = vadd.f32 %v2213_v55, %v1294_v27 }
 0x577   :  { %v1387_v61 = vmul.f32 -1.442695, %v1320_v59 }
 0x579   :  { %v1468_v62 = vpop.eup %1467  ;;  %1469 = vpow2.f32 %v1387_v61 }
 0x57a   :  { %v1303_v0 = vadd.f32 1.0, %v1468_v62 }
 0x57c   :  { %1471 = vrcp.f32 %v1303_v0  ;;  %v1315_v14 = vand.u32 2147483648, %v1303_v0  ;;  %v1313_v21 = vand.u32 2147483647, %v1303_v0  ;;  %vm1309_vm9 = vweird.f32 %v1303_v0 }
 0x57e   :  { %v1316_v13 = vor.u32 1.1754944e-38, %v1315_v14  ;;  %vm1314_vm11 = vcmp.eq.f32.partialorder %v1313_v21, 8.507059e+37 }
 0x57f   :  { %v1470_v4 = vpop.eup %1469 }
 0x580   :  { %v1324_v5 = vadd.f32 1.0, %v1470_v4 }
 0x582   :  { %v1472_v7 = vpop.eup %1471  ;;  %1473 = vrcp.f32 %v1324_v5  ;;  %v1336_v41 = vand.u32 2147483648, %v1324_v5  ;;  %v1334_v10 = vand.u32 2147483647, %v1324_v5  ;;  %vm1330_vm13 = vweird.f32 %v1324_v5 }
 0x583   :  { %v1305_v8 = vmul.f32 %v1472_v7, %v1303_v0  ;;  %vm1310_vm8 = vweird.f32 %v1472_v7 }
 0x584   :  { %vm1311_vm10 = vmor %vm1309_vm9, %vm1310_vm8  ;;  %v1337_v17 = vor.u32 1.1754944e-38, %v1336_v41  ;;  %vm1335_vm15 = vcmp.eq.f32.partialorder %v1334_v10, 8.507059e+37 }
 0x585   :  { %v1306_v11 = vsub.f32 1.0, %v1305_v8 }
 0x587   :  { %v1307_v20 = vmul.f32 %v1472_v7, %v1306_v11 }
 0x588   :  { %v1474_v26 = vpop.eup %1473 }
 0x589   :  { %v1326_v32 = vmul.f32 %v1474_v26, %v1324_v5  ;;  %v1308_v33 = vadd.f32 %v1472_v7, %v1307_v20  ;;  %vm1331_vm12 = vweird.f32 %v1474_v26 }
 0x58a   :  { %vm1332_vm14 = vmor %vm1330_vm13, %vm1331_vm12 }
 0x58b   :  { %v1327_v16 = vsub.f32 1.0, %v1326_v32  ;;  %v1312_v25 = vsel %vm1311_vm10, %v1472_v7, %v1308_v33 }
 0x58c   :  { %v1317_v34 = vsel %vm1314_vm11, %v1316_v13, %v1312_v25 }
 0x58d   :  { %v1328_v40 = vmul.f32 %v1474_v26, %v1327_v16  ;;  %v1342_v47 = vmul.f32 %v1341_v28, %v1317_v34 }
 0x58f   :  { %v1329_v42 = vadd.f32 %v1474_v26, %v1328_v40  ;;  %v1343_v18 = vadd.f32 %v1342_v47, %v1340_v37 }
 0x591   :  { %v1333_v46 = vsel %vm1332_vm14, %v1474_v26, %v1329_v42  ;;  %1475 = vtanh.f32 %v1343_v18 }
 0x592   :  { %v1338_v24 = vsel %vm1335_vm15, %v1337_v17, %v1333_v46 }
 0x593   :  { %v1345_v36 = vsub.f32 1.0, %v1338_v24  ;;  %v1347_v22 = vmul.f32 %v1338_v24, %v1186_v48 }
 0x597   :  { %v1476_v55 = vpop.eup %1475 }
 0x598   :  { %v1346_v12 = vmul.f32 %v1476_v55, %v1345_v36 }
 0x59a   :  { %v1348_v1 = vadd.f32 %v1347_v22, %v1346_v12 }
 0x59c   :  { %1350 = vst [vmem:[#allocation8 + $0x38] sm:$0xff] %v1348_v1 }
 0x59d   :  { %1364 = dma.vmem_to_hbm [thread:$0]  %s1357_s26, 1024, %s1359_s29, [#allocation5], %s1562_s30, %s1562_s30, %s1563_s4  }
 0x59e   :  { %1554 = dma.done.wait [#allocation5], 1024  }
 0x59f   :  { %1555 = vsyncadd [#allocation5], 4294966272 }
 0x5a0   :  { %1369 = vsyncpa [#allocation4], 1 }
 0x5a1   :  { %1370 = vsyncpa [#allocation7], 1 }
 0x5a2   :  { %1371 = vsyncpa [#allocation5], 1 }

</bundles_post_ra>
